<compile_context>
chip_gen: v5e
topology: v5e:2x2
jax: 0.10.0
libtpu: 0.0.40
codegen_flags: <defaults>
</compile_context>

<pallas_src>
import functools
import math

import jax
import jax.numpy as jnp
from jax.experimental import pallas as pl
from jax.experimental.pallas import tpu as pltpu

_LN_EPS = 1e-5
_VMEM_LIMIT = 64 * 1024 * 1024  # <= physical VMEM on v5e/v6e/v7x


def _cparams(n_axes=1, semantics="parallel"):
    return pltpu.CompilerParams(
        dimension_semantics=(semantics,) * n_axes,
        vmem_limit_bytes=_VMEM_LIMIT,
    )


def _choose_tm(m):
    # largest row-tile (multiple of 8, <=256) that divides M; else full M
    for tm in (256, 128, 64, 32, 16, 8):
        if m % tm == 0:
            return tm
    return m


# ---------------------------------------------------------------------------
# Kernels
# ---------------------------------------------------------------------------
def _linear_kernel(x_ref, w_ref, b_ref, o_ref):
    # y = x @ W + b ; bf16 operands, f32 accumulation
    acc = jnp.dot(x_ref[...], w_ref[...], preferred_element_type=jnp.float32)
    o_ref[...] = (acc + b_ref[...]).astype(o_ref.dtype)


def _mha_kernel(x_ref, wqkv_ref, bqkv_ref, wo_ref, bo_ref, g_ref, bln_ref,
                o_ref, *, n_head, dh, scale, eps):
    # One batch element per grid step:
    #   fused QKV proj -> per-head attention -> out proj -> +residual -> LN
    x = x_ref[0]                                            # (S, D) bf16
    d_model = n_head * dh

    qkv = (jnp.dot(x, wqkv_ref[...], preferred_element_type=jnp.float32)
           + bqkv_ref[...])                                 # (S, 3D) f32
    qkv = qkv.astype(x.dtype)                               # bf16 for MXU

    head_outs = []
    for h in range(n_head):                                 # static unroll
        q = qkv[:, h * dh:(h + 1) * dh]                     # (S, dh)
        k = qkv[:, d_model + h * dh: d_model + (h + 1) * dh]
        v = qkv[:, 2 * d_model + h * dh: 2 * d_model + (h + 1) * dh]
        # contract last dims directly (no explicit k.T through the XLU)
        s = jax.lax.dot_general(
            q, k, (((1,), (1,)), ((), ())),
            preferred_element_type=jnp.float32) * scale     # (S, S) f32
        m = jnp.max(s, axis=-1, keepdims=True)
        p = jnp.exp(s - m)
        p = p * pl.reciprocal(jnp.sum(p, axis=-1, keepdims=True), approx=True)
        head_outs.append(jnp.dot(p.astype(v.dtype), v,
                                 preferred_element_type=jnp.float32))
    attn = jnp.concatenate(head_outs, axis=-1)              # (S, D) f32

    proj = (jnp.dot(attn.astype(x.dtype), wo_ref[...],
                    preferred_element_type=jnp.float32) + bo_ref[...])

    # residual + post-LN in f32
    y = proj + x.astype(jnp.float32)
    mean = jnp.mean(y, axis=-1, keepdims=True)
    yc = y - mean
    var = jnp.mean(yc * yc, axis=-1, keepdims=True)
    o_ref[0] = (yc * jax.lax.rsqrt(var + eps) * g_ref[...]
                + bln_ref[...]).astype(o_ref.dtype)


def _ffn_ln_kernel(x_ref, w1_ref, b1_ref, w2_ref, b2_ref, g_ref, bln_ref,
                   o_ref, *, eps):
    # y = LayerNorm(relu(x@W1+b1)@W2+b2 + x) -- intermediate stays in VMEM
    x = x_ref[...]                                          # (tm, D) bf16
    h = jnp.dot(x, w1_ref[...], preferred_element_type=jnp.float32) + b1_ref[...]
    h = jnp.maximum(h, 0.0).astype(x.dtype)
    f = jnp.dot(h, w2_ref[...], preferred_element_type=jnp.float32) + b2_ref[...]
    y = f + x.astype(jnp.float32)
    mean = jnp.mean(y, axis=-1, keepdims=True)
    yc = y - mean
    var = jnp.mean(yc * yc, axis=-1, keepdims=True)
    o_ref[...] = (yc * jax.lax.rsqrt(var + eps) * g_ref[...]
                  + bln_ref[...]).astype(o_ref.dtype)


def _head_kernel(x_ref, g_ref, bln_ref, w_ref, b_ref, o_ref, *, eps):
    # LayerNorm (no residual) + flatten + Linear(S*D -> 1) as a VPU reduction.
    x = x_ref[...].astype(jnp.float32)                      # (B, S, D)
    mean = jnp.mean(x, axis=-1, keepdims=True)
    xc = x - mean
    var = jnp.mean(xc * xc, axis=-1, keepdims=True)
    xn = xc * jax.lax.rsqrt(var + eps) * g_ref[...] + bln_ref[...]
    prod = xn * w_ref[...]                                  # (B, S, D)
    per_row = jnp.sum(prod, axis=-1)                        # (B, S)
    o_ref[...] = jnp.sum(per_row, axis=-1, keepdims=True) + b_ref[...]


# ---------------------------------------------------------------------------
# Wrappers around pallas_call
# ---------------------------------------------------------------------------
def linear(x, w, b):
    M, K = x.shape
    N = w.shape[1]
    tm = _choose_tm(M)
    return pl.pallas_call(
        _linear_kernel,
        out_shape=jax.ShapeDtypeStruct((M, N), x.dtype),
        grid=(M // tm,),
        in_specs=[
            pl.BlockSpec((tm, K), lambda i: (i, 0)),
            pl.BlockSpec((K, N), lambda i: (0, 0)),   # weight stays VMEM-resident
            pl.BlockSpec((1, N), lambda i: (0, 0)),
        ],
        out_specs=pl.BlockSpec((tm, N), lambda i: (i, 0)),
        compiler_params=_cparams(1),
    )(x, w, b.reshape(1, N))


def mha_block(x_bsd, wqkv, bqkv, wo, bo, g, beta, *, n_head, eps=_LN_EPS):
    B, S, D = x_bsd.shape
    dh = D // n_head
    scale = 1.0 / math.sqrt(dh)
    kernel = functools.partial(_mha_kernel, n_head=n_head, dh=dh,
                               scale=scale, eps=eps)
    x_spec = pl.BlockSpec((1, S, D), lambda b: (b, 0, 0))
    return pl.pallas_call(
        kernel,
        out_shape=jax.ShapeDtypeStruct((B, S, D), x_bsd.dtype),
        grid=(B,),
        in_specs=[
            x_spec,
            pl.BlockSpec((D, 3 * D), lambda b: (0, 0)),
            pl.BlockSpec((1, 3 * D), lambda b: (0, 0)),
            pl.BlockSpec((D, D), lambda b: (0, 0)),
            pl.BlockSpec((1, D), lambda b: (0, 0)),
            pl.BlockSpec((1, D), lambda b: (0, 0)),
            pl.BlockSpec((1, D), lambda b: (0, 0)),
        ],
        out_specs=x_spec,
        compiler_params=_cparams(1),
    )(x_bsd, wqkv, bqkv.reshape(1, 3 * D), wo, bo.reshape(1, D),
      g.reshape(1, D), beta.reshape(1, D))


def ffn_ln(x, w1, b1, w2, b2, g, beta, eps=_LN_EPS):
    M, D = x.shape
    H = w1.shape[1]
    tm = _choose_tm(M)
    kernel = functools.partial(_ffn_ln_kernel, eps=eps)
    return pl.pallas_call(
        kernel,
        out_shape=jax.ShapeDtypeStruct((M, D), x.dtype),
        grid=(M // tm,),
        in_specs=[
            pl.BlockSpec((tm, D), lambda i: (i, 0)),
            pl.BlockSpec((D, H), lambda i: (0, 0)),
            pl.BlockSpec((1, H), lambda i: (0, 0)),
            pl.BlockSpec((H, D), lambda i: (0, 0)),
            pl.BlockSpec((1, D), lambda i: (0, 0)),
            pl.BlockSpec((1, D), lambda i: (0, 0)),
            pl.BlockSpec((1, D), lambda i: (0, 0)),
        ],
        out_specs=pl.BlockSpec((tm, D), lambda i: (i, 0)),
        compiler_params=_cparams(1),
    )(x, w1, b1.reshape(1, H), w2, b2.reshape(1, D),
      g.reshape(1, D), beta.reshape(1, D))


def class_head(x_bsd, g, beta, w_sd, b, eps=_LN_EPS):
    B, S, D = x_bsd.shape
    kernel = functools.partial(_head_kernel, eps=eps)
    return pl.pallas_call(
        kernel,
        out_shape=jax.ShapeDtypeStruct((B, 1), jnp.float32),
        grid=(1,),
        in_specs=[
            pl.BlockSpec((B, S, D), lambda i: (0, 0, 0)),
            pl.BlockSpec((1, D), lambda i: (0, 0)),
            pl.BlockSpec((1, D), lambda i: (0, 0)),
            pl.BlockSpec((S, D), lambda i: (0, 0)),
            pl.BlockSpec((1, 1), lambda i: (0, 0)),
        ],
        out_specs=pl.BlockSpec((B, 1), lambda i: (0, 0)),
        compiler_params=_cparams(1, "arbitrary"),
    )(x_bsd, g.reshape(1, D), beta.reshape(1, D), w_sd, b.reshape(1, 1))


# ---------------------------------------------------------------------------
# Parameter construction (deterministic, synthetic; bf16 weights, f32 biases)
# ---------------------------------------------------------------------------
def init_params(key, *, input_dim, d_model, n_head, ffn_hidden, n_layers,
                seq_len, n_classes=1):
    assert n_classes == 1

    def dense(k, fan_in, fan_out, dtype=jnp.bfloat16):
        kw, _ = jax.random.split(k)
        w = (jax.random.normal(kw, (fan_in, fan_out), jnp.float32) * 0.02).astype(dtype)
        b = jnp.zeros((fan_out,), jnp.float32)
        return w, b

    keys = jax.random.split(key, 2 + n_layers)
    params = {}
    params["in_w"], params["in_b"] = dense(keys[0], input_dim, d_model)

    layers = []
    for li in range(n_layers):
        lk = jax.random.split(keys[2 + li], 4)
        layer = {}
        # fused Q|K|V projection: one (D, 3D) GEMM per layer
        layer["wqkv"], layer["bqkv"] = dense(lk[0], d_model, 3 * d_model)
        layer["wo"], layer["bo"] = dense(lk[1], d_model, d_model)
        layer["w1"], layer["b1"] = dense(lk[2], d_model, ffn_hidden)
        layer["w2"], layer["b2"] = dense(lk[3], ffn_hidden, d_model)
        layer["ln1_g"] = jnp.ones((d_model,), jnp.float32)
        layer["ln1_b"] = jnp.zeros((d_model,), jnp.float32)
        layer["ln2_g"] = jnp.ones((d_model,), jnp.float32)
        layer["ln2_b"] = jnp.zeros((d_model,), jnp.float32)
        layers.append(layer)
    params["layers"] = layers

    params["cls_ln_g"] = jnp.ones((d_model,), jnp.float32)
    params["cls_ln_b"] = jnp.zeros((d_model,), jnp.float32)
    w, b = dense(keys[1], seq_len * d_model, n_classes, dtype=jnp.float32)
    # head weight stored as (S, D) so flatten order matches x.reshape(B, S*D)
    params["cls_w_sd"] = w.reshape(seq_len, d_model)
    params["cls_b"] = b
    return params


# ---------------------------------------------------------------------------
# Forward pass
# ---------------------------------------------------------------------------
def transformer_forward(params, src, *, d_model, n_head):
    B, S, Din = src.shape

    # encoder input layer (bf16 activations, f32 MXU accumulation)
    x = linear(src.reshape(B * S, Din).astype(jnp.bfloat16),
               params["in_w"], params["in_b"])              # (B*S, D) bf16

    for layer in params["layers"]:
        # fused: QKV proj + MHA + out-proj + residual + LayerNorm
        x3 = mha_block(x.reshape(B, S, d_model),
                       layer["wqkv"], layer["bqkv"], layer["wo"], layer["bo"],
                       layer["ln1_g"], layer["ln1_b"], n_head=n_head)
        x = x3.reshape(B * S, d_model)
        # fused: FFN + residual + LayerNorm
        x = ffn_ln(x, layer["w1"], layer["b1"], layer["w2"], layer["b2"],
                   layer["ln2_g"], layer["ln2_b"])

    # fused classification head: LayerNorm + flatten + Linear(S*D -> 1)
    return class_head(x.reshape(B, S, d_model),
                      params["cls_ln_g"], params["cls_ln_b"],
                      params["cls_w_sd"], params["cls_b"])   # (B, 1) f32


# ---------------------------------------------------------------------------
# Demo
# ---------------------------------------------------------------------------
if __name__ == "__main__":
    B, S = 2, 8
    INPUT_DIM, D_MODEL, N_HEAD, FFN_HIDDEN, N_LAYERS = 16, 32, 4, 64, 2

    key = jax.random.PRNGKey(0)
    k_params, k_src = jax.random.split(key)

    params = init_params(
        k_params,
        input_dim=INPUT_DIM,
        d_model=D_MODEL,
        n_head=N_HEAD,
        ffn_hidden=FFN_HIDDEN,
        n_layers=N_LAYERS,
        seq_len=S,
        n_classes=1,
    )
    src = jax.random.normal(k_src, (B, S, INPUT_DIM), jnp.float32)

    fwd = jax.jit(
        functools.partial(transformer_forward, d_model=D_MODEL, n_head=N_HEAD)
    )
    out = fwd(params, src)
    jax.block_until_ready(out)
    assert out.shape == (B, 1) and out.dtype == jnp.float32
    print("KERNEL_OK")
</pallas_src>

<mosaic_0001>
module attributes {stable_mosaic.version = 11 : i64} {
  func.func @_mha_kernel(%arg0: i32, %arg1: memref<1x8x32xbf16, #tpu.memory_space<vmem>>, %arg2: memref<32x96xbf16, #tpu.memory_space<vmem>>, %arg3: memref<1x96xf32, #tpu.memory_space<vmem>>, %arg4: memref<32x32xbf16, #tpu.memory_space<vmem>>, %arg5: memref<1x32xf32, #tpu.memory_space<vmem>>, %arg6: memref<1x32xf32, #tpu.memory_space<vmem>>, %arg7: memref<1x32xf32, #tpu.memory_space<vmem>>, %arg8: memref<1x8x32xbf16, #tpu.memory_space<vmem>>) attributes {dimension_semantics = [#tpu.dimension_semantics<parallel>], iteration_bounds = array<i64: 2>, scalar_prefetch = 0 : i64, scratch_operands = 0 : i64, tpu.core_type = #tpu.core_type<tc>, window_params = [{transform_indices = @transform_0, window_bounds = array<i64: 1, 8, 32>}, {pipeline_mode = #tpu.pipeline_mode<synchronous>, transform_indices = @transform_1, window_bounds = array<i64: 32, 96>}, {pipeline_mode = #tpu.pipeline_mode<synchronous>, transform_indices = @transform_2, window_bounds = array<i64: 1, 96>}, {pipeline_mode = #tpu.pipeline_mode<synchronous>, transform_indices = @transform_3, window_bounds = array<i64: 32, 32>}, {pipeline_mode = #tpu.pipeline_mode<synchronous>, transform_indices = @transform_4, window_bounds = array<i64: 1, 32>}, {pipeline_mode = #tpu.pipeline_mode<synchronous>, transform_indices = @transform_5, window_bounds = array<i64: 1, 32>}, {pipeline_mode = #tpu.pipeline_mode<synchronous>, transform_indices = @transform_6, window_bounds = array<i64: 1, 32>}, {transform_indices = @transform_7, window_bounds = array<i64: 1, 8, 32>}]} {
    %c0 = arith.constant 0 : index
    %c0_0 = arith.constant 0 : index
    %c0_1 = arith.constant 0 : index
    %0 = vector.load %arg1[%c0, %c0_0, %c0_1] : memref<1x8x32xbf16, #tpu.memory_space<vmem>>, vector<1x8x32xbf16>
    %1 = vector.shape_cast %0 : vector<1x8x32xbf16> to vector<8x32xbf16>
    %c0_2 = arith.constant 0 : index
    %c0_3 = arith.constant 0 : index
    %2 = vector.load %arg2[%c0_2, %c0_3] : memref<32x96xbf16, #tpu.memory_space<vmem>>, vector<32x96xbf16>
    %cst = arith.constant dense<0.000000e+00> : vector<8x96xf32>
    %3 = tpu.matmul %1, %2, %cst {dimension_numbers = #tpu.dot_dimension_numbers<[1], [0], [0], [1], [0, 0, 1, 1], [], []>} : vector<8x32xbf16>, vector<32x96xbf16>, vector<8x96xf32> -> vector<8x96xf32>
    %c0_4 = arith.constant 0 : index
    %c0_5 = arith.constant 0 : index
    %4 = vector.load %arg3[%c0_4, %c0_5] : memref<1x96xf32, #tpu.memory_space<vmem>>, vector<1x96xf32>
    %5 = vector.broadcast %4 : vector<1x96xf32> to vector<8x96xf32>
    %6 = arith.addf %3, %5 : vector<8x96xf32>
    %7 = arith.truncf %6 : vector<8x96xf32> to vector<8x96xbf16>
    %8 = vector.extract_strided_slice %7 {offsets = [0, 0], sizes = [8, 8], strides = [1, 1]} : vector<8x96xbf16> to vector<8x8xbf16>
    %9 = vector.extract_strided_slice %7 {offsets = [0, 32], sizes = [8, 8], strides = [1, 1]} : vector<8x96xbf16> to vector<8x8xbf16>
    %10 = vector.extract_strided_slice %7 {offsets = [0, 64], sizes = [8, 8], strides = [1, 1]} : vector<8x96xbf16> to vector<8x8xbf16>
    %cst_6 = arith.constant dense<0.000000e+00> : vector<8x8xf32>
    %11 = tpu.matmul %8, %9, %cst_6 {dimension_numbers = #tpu.dot_dimension_numbers<[1], [1], [0], [0], [0, 0, 1, 0], [], []>} : vector<8x8xbf16>, vector<8x8xbf16>, vector<8x8xf32> -> vector<8x8xf32>
    %cst_7 = arith.constant 0.353553385 : f32
    %12 = vector.broadcast %cst_7 : f32 to vector<8x8xf32>
    %13 = arith.mulf %11, %12 : vector<8x8xf32>
    %cst_8 = arith.constant dense<0xFF800000> : vector<8xf32>
    %14 = vector.multi_reduction <maximumf>, %13, %cst_8 [1] : vector<8x8xf32> to vector<8xf32>
    %15 = vector.shape_cast %14 : vector<8xf32> to vector<8x1xf32>
    %16 = vector.broadcast %15 : vector<8x1xf32> to vector<8x8xf32>
    %17 = arith.subf %13, %16 : vector<8x8xf32>
    %18 = math.exp %17 : vector<8x8xf32>
    %cst_9 = arith.constant dense<0.000000e+00> : vector<8xf32>
    %19 = vector.multi_reduction <add>, %18, %cst_9 [1] : vector<8x8xf32> to vector<8xf32>
    %20 = vector.shape_cast %19 : vector<8xf32> to vector<8x1xf32>
    %21 = tpu.reciprocal %20 {approx = true} : vector<8x1xf32> -> vector<8x1xf32>
    %22 = vector.broadcast %21 : vector<8x1xf32> to vector<8x8xf32>
    %23 = arith.mulf %18, %22 : vector<8x8xf32>
    %24 = arith.truncf %23 : vector<8x8xf32> to vector<8x8xbf16>
    %cst_10 = arith.constant dense<0.000000e+00> : vector<8x8xf32>
    %25 = tpu.matmul %24, %10, %cst_10 {dimension_numbers = #tpu.dot_dimension_numbers<[1], [0], [0], [1], [0, 0, 1, 1], [], []>} : vector<8x8xbf16>, vector<8x8xbf16>, vector<8x8xf32> -> vector<8x8xf32>
    %26 = vector.extract_strided_slice %7 {offsets = [0, 8], sizes = [8, 8], strides = [1, 1]} : vector<8x96xbf16> to vector<8x8xbf16>
    %27 = vector.extract_strided_slice %7 {offsets = [0, 40], sizes = [8, 8], strides = [1, 1]} : vector<8x96xbf16> to vector<8x8xbf16>
    %28 = vector.extract_strided_slice %7 {offsets = [0, 72], sizes = [8, 8], strides = [1, 1]} : vector<8x96xbf16> to vector<8x8xbf16>
    %cst_11 = arith.constant dense<0.000000e+00> : vector<8x8xf32>
    %29 = tpu.matmul %26, %27, %cst_11 {dimension_numbers = #tpu.dot_dimension_numbers<[1], [1], [0], [0], [0, 0, 1, 0], [], []>} : vector<8x8xbf16>, vector<8x8xbf16>, vector<8x8xf32> -> vector<8x8xf32>
    %cst_12 = arith.constant 0.353553385 : f32
    %30 = vector.broadcast %cst_12 : f32 to vector<8x8xf32>
    %31 = arith.mulf %29, %30 : vector<8x8xf32>
    %cst_13 = arith.constant dense<0xFF800000> : vector<8xf32>
    %32 = vector.multi_reduction <maximumf>, %31, %cst_13 [1] : vector<8x8xf32> to vector<8xf32>
    %33 = vector.shape_cast %32 : vector<8xf32> to vector<8x1xf32>
    %34 = vector.broadcast %33 : vector<8x1xf32> to vector<8x8xf32>
    %35 = arith.subf %31, %34 : vector<8x8xf32>
    %36 = math.exp %35 : vector<8x8xf32>
    %cst_14 = arith.constant dense<0.000000e+00> : vector<8xf32>
    %37 = vector.multi_reduction <add>, %36, %cst_14 [1] : vector<8x8xf32> to vector<8xf32>
    %38 = vector.shape_cast %37 : vector<8xf32> to vector<8x1xf32>
    %39 = tpu.reciprocal %38 {approx = true} : vector<8x1xf32> -> vector<8x1xf32>
    %40 = vector.broadcast %39 : vector<8x1xf32> to vector<8x8xf32>
    %41 = arith.mulf %36, %40 : vector<8x8xf32>
    %42 = arith.truncf %41 : vector<8x8xf32> to vector<8x8xbf16>
    %cst_15 = arith.constant dense<0.000000e+00> : vector<8x8xf32>
    %43 = tpu.matmul %42, %28, %cst_15 {dimension_numbers = #tpu.dot_dimension_numbers<[1], [0], [0], [1], [0, 0, 1, 1], [], []>} : vector<8x8xbf16>, vector<8x8xbf16>, vector<8x8xf32> -> vector<8x8xf32>
    %44 = vector.extract_strided_slice %7 {offsets = [0, 16], sizes = [8, 8], strides = [1, 1]} : vector<8x96xbf16> to vector<8x8xbf16>
    %45 = vector.extract_strided_slice %7 {offsets = [0, 48], sizes = [8, 8], strides = [1, 1]} : vector<8x96xbf16> to vector<8x8xbf16>
    %46 = vector.extract_strided_slice %7 {offsets = [0, 80], sizes = [8, 8], strides = [1, 1]} : vector<8x96xbf16> to vector<8x8xbf16>
    %cst_16 = arith.constant dense<0.000000e+00> : vector<8x8xf32>
    %47 = tpu.matmul %44, %45, %cst_16 {dimension_numbers = #tpu.dot_dimension_numbers<[1], [1], [0], [0], [0, 0, 1, 0], [], []>} : vector<8x8xbf16>, vector<8x8xbf16>, vector<8x8xf32> -> vector<8x8xf32>
    %cst_17 = arith.constant 0.353553385 : f32
    %48 = vector.broadcast %cst_17 : f32 to vector<8x8xf32>
    %49 = arith.mulf %47, %48 : vector<8x8xf32>
    %cst_18 = arith.constant dense<0xFF800000> : vector<8xf32>
    %50 = vector.multi_reduction <maximumf>, %49, %cst_18 [1] : vector<8x8xf32> to vector<8xf32>
    %51 = vector.shape_cast %50 : vector<8xf32> to vector<8x1xf32>
    %52 = vector.broadcast %51 : vector<8x1xf32> to vector<8x8xf32>
    %53 = arith.subf %49, %52 : vector<8x8xf32>
    %54 = math.exp %53 : vector<8x8xf32>
    %cst_19 = arith.constant dense<0.000000e+00> : vector<8xf32>
    %55 = vector.multi_reduction <add>, %54, %cst_19 [1] : vector<8x8xf32> to vector<8xf32>
    %56 = vector.shape_cast %55 : vector<8xf32> to vector<8x1xf32>
    %57 = tpu.reciprocal %56 {approx = true} : vector<8x1xf32> -> vector<8x1xf32>
    %58 = vector.broadcast %57 : vector<8x1xf32> to vector<8x8xf32>
    %59 = arith.mulf %54, %58 : vector<8x8xf32>
    %60 = arith.truncf %59 : vector<8x8xf32> to vector<8x8xbf16>
    %cst_20 = arith.constant dense<0.000000e+00> : vector<8x8xf32>
    %61 = tpu.matmul %60, %46, %cst_20 {dimension_numbers = #tpu.dot_dimension_numbers<[1], [0], [0], [1], [0, 0, 1, 1], [], []>} : vector<8x8xbf16>, vector<8x8xbf16>, vector<8x8xf32> -> vector<8x8xf32>
    %62 = vector.extract_strided_slice %7 {offsets = [0, 24], sizes = [8, 8], strides = [1, 1]} : vector<8x96xbf16> to vector<8x8xbf16>
    %63 = vector.extract_strided_slice %7 {offsets = [0, 56], sizes = [8, 8], strides = [1, 1]} : vector<8x96xbf16> to vector<8x8xbf16>
    %64 = vector.extract_strided_slice %7 {offsets = [0, 88], sizes = [8, 8], strides = [1, 1]} : vector<8x96xbf16> to vector<8x8xbf16>
    %cst_21 = arith.constant dense<0.000000e+00> : vector<8x8xf32>
    %65 = tpu.matmul %62, %63, %cst_21 {dimension_numbers = #tpu.dot_dimension_numbers<[1], [1], [0], [0], [0, 0, 1, 0], [], []>} : vector<8x8xbf16>, vector<8x8xbf16>, vector<8x8xf32> -> vector<8x8xf32>
    %cst_22 = arith.constant 0.353553385 : f32
    %66 = vector.broadcast %cst_22 : f32 to vector<8x8xf32>
    %67 = arith.mulf %65, %66 : vector<8x8xf32>
    %cst_23 = arith.constant dense<0xFF800000> : vector<8xf32>
    %68 = vector.multi_reduction <maximumf>, %67, %cst_23 [1] : vector<8x8xf32> to vector<8xf32>
    %69 = vector.shape_cast %68 : vector<8xf32> to vector<8x1xf32>
    %70 = vector.broadcast %69 : vector<8x1xf32> to vector<8x8xf32>
    %71 = arith.subf %67, %70 : vector<8x8xf32>
    %72 = math.exp %71 : vector<8x8xf32>
    %cst_24 = arith.constant dense<0.000000e+00> : vector<8xf32>
    %73 = vector.multi_reduction <add>, %72, %cst_24 [1] : vector<8x8xf32> to vector<8xf32>
    %74 = vector.shape_cast %73 : vector<8xf32> to vector<8x1xf32>
    %75 = tpu.reciprocal %74 {approx = true} : vector<8x1xf32> -> vector<8x1xf32>
    %76 = vector.broadcast %75 : vector<8x1xf32> to vector<8x8xf32>
    %77 = arith.mulf %72, %76 : vector<8x8xf32>
    %78 = arith.truncf %77 : vector<8x8xf32> to vector<8x8xbf16>
    %cst_25 = arith.constant dense<0.000000e+00> : vector<8x8xf32>
    %79 = tpu.matmul %78, %64, %cst_25 {dimension_numbers = #tpu.dot_dimension_numbers<[1], [0], [0], [1], [0, 0, 1, 1], [], []>} : vector<8x8xbf16>, vector<8x8xbf16>, vector<8x8xf32> -> vector<8x8xf32>
    %80 = tpu.concatenate %25, %43, %61, %79 in 1 : vector<8x8xf32>, vector<8x8xf32>, vector<8x8xf32>, vector<8x8xf32> -> vector<8x32xf32>
    %81 = arith.truncf %80 : vector<8x32xf32> to vector<8x32xbf16>
    %c0_26 = arith.constant 0 : index
    %c0_27 = arith.constant 0 : index
    %82 = vector.load %arg4[%c0_26, %c0_27] : memref<32x32xbf16, #tpu.memory_space<vmem>>, vector<32x32xbf16>
    %cst_28 = arith.constant dense<0.000000e+00> : vector<8x32xf32>
    %83 = tpu.matmul %81, %82, %cst_28 {dimension_numbers = #tpu.dot_dimension_numbers<[1], [0], [0], [1], [0, 0, 1, 1], [], []>} : vector<8x32xbf16>, vector<32x32xbf16>, vector<8x32xf32> -> vector<8x32xf32>
    %c0_29 = arith.constant 0 : index
    %c0_30 = arith.constant 0 : index
    %84 = vector.load %arg5[%c0_29, %c0_30] : memref<1x32xf32, #tpu.memory_space<vmem>>, vector<1x32xf32>
    %85 = vector.broadcast %84 : vector<1x32xf32> to vector<8x32xf32>
    %86 = arith.addf %83, %85 : vector<8x32xf32>
    %87 = arith.extf %1 : vector<8x32xbf16> to vector<8x32xf32>
    %88 = arith.addf %86, %87 : vector<8x32xf32>
    %cst_31 = arith.constant dense<0.000000e+00> : vector<8xf32>
    %89 = vector.multi_reduction <add>, %88, %cst_31 [1] : vector<8x32xf32> to vector<8xf32>
    %90 = vector.shape_cast %89 : vector<8xf32> to vector<8x1xf32>
    %cst_32 = arith.constant 3.200000e+01 : f32
    %91 = vector.broadcast %cst_32 : f32 to vector<8x1xf32>
    %92 = arith.divf %90, %91 : vector<8x1xf32>
    %93 = vector.broadcast %92 : vector<8x1xf32> to vector<8x32xf32>
    %94 = arith.subf %88, %93 : vector<8x32xf32>
    %95 = arith.mulf %94, %94 : vector<8x32xf32>
    %cst_33 = arith.constant dense<0.000000e+00> : vector<8xf32>
    %96 = vector.multi_reduction <add>, %95, %cst_33 [1] : vector<8x32xf32> to vector<8xf32>
    %97 = vector.shape_cast %96 : vector<8xf32> to vector<8x1xf32>
    %cst_34 = arith.constant 3.200000e+01 : f32
    %98 = vector.broadcast %cst_34 : f32 to vector<8x1xf32>
    %99 = arith.divf %97, %98 : vector<8x1xf32>
    %cst_35 = arith.constant 9.99999974E-6 : f32
    %100 = vector.broadcast %cst_35 : f32 to vector<8x1xf32>
    %101 = arith.addf %99, %100 : vector<8x1xf32>
    %102 = math.rsqrt %101 : vector<8x1xf32>
    %103 = vector.broadcast %102 : vector<8x1xf32> to vector<8x32xf32>
    %104 = arith.mulf %94, %103 : vector<8x32xf32>
    %c0_36 = arith.constant 0 : index
    %c0_37 = arith.constant 0 : index
    %105 = vector.load %arg6[%c0_36, %c0_37] : memref<1x32xf32, #tpu.memory_space<vmem>>, vector<1x32xf32>
    %106 = vector.broadcast %105 : vector<1x32xf32> to vector<8x32xf32>
    %107 = arith.mulf %104, %106 : vector<8x32xf32>
    %c0_38 = arith.constant 0 : index
    %c0_39 = arith.constant 0 : index
    %108 = vector.load %arg7[%c0_38, %c0_39] : memref<1x32xf32, #tpu.memory_space<vmem>>, vector<1x32xf32>
    %109 = vector.broadcast %108 : vector<1x32xf32> to vector<8x32xf32>
    %110 = arith.addf %107, %109 : vector<8x32xf32>
    %111 = arith.truncf %110 : vector<8x32xf32> to vector<8x32xbf16>
    %c0_40 = arith.constant 0 : index
    %c0_41 = arith.constant 0 : index
    %c0_42 = arith.constant 0 : index
    %112 = vector.load %arg8[%c0_40, %c0_41, %c0_42] : memref<1x8x32xbf16, #tpu.memory_space<vmem>>, vector<1x8x32xbf16>
    %113 = vector.shape_cast %112 : vector<1x8x32xbf16> to vector<8x32xbf16>
    %114 = vector.shape_cast %111 : vector<8x32xbf16> to vector<1x8x32xbf16>
    tpu.vector_store %arg8[%c0_40, %c0_41, %c0_42], %114 {strides = array<i32>} : memref<1x8x32xbf16, #tpu.memory_space<vmem>>, vector<1x8x32xbf16>,
    return
  }
  func.func @transform_0(%arg0: i32) -> (i32, i32, i32) {
    %c0_i32 = arith.constant 0 : i32
    %c0_i32_0 = arith.constant 0 : i32
    %c0_i32_1 = arith.constant 0 : i32
    return %arg0, %c0_i32, %c0_i32_0 : i32, i32, i32
  }
  func.func @transform_1(%arg0: i32) -> (i32, i32) {
    %c0_i32 = arith.constant 0 : i32
    %c0_i32_0 = arith.constant 0 : i32
    %c0_i32_1 = arith.constant 0 : i32
    return %c0_i32, %c0_i32_0 : i32, i32
  }
  func.func @transform_2(%arg0: i32) -> (i32, i32) {
    %c0_i32 = arith.constant 0 : i32
    %c0_i32_0 = arith.constant 0 : i32
    %c0_i32_1 = arith.constant 0 : i32
    return %c0_i32, %c0_i32_0 : i32, i32
  }
  func.func @transform_3(%arg0: i32) -> (i32, i32) {
    %c0_i32 = arith.constant 0 : i32
    %c0_i32_0 = arith.constant 0 : i32
    %c0_i32_1 = arith.constant 0 : i32
    return %c0_i32, %c0_i32_0 : i32, i32
  }
  func.func @transform_4(%arg0: i32) -> (i32, i32) {
    %c0_i32 = arith.constant 0 : i32
    %c0_i32_0 = arith.constant 0 : i32
    %c0_i32_1 = arith.constant 0 : i32
    return %c0_i32, %c0_i32_0 : i32, i32
  }
  func.func @transform_5(%arg0: i32) -> (i32, i32) {
    %c0_i32 = arith.constant 0 : i32
    %c0_i32_0 = arith.constant 0 : i32
    %c0_i32_1 = arith.constant 0 : i32
    return %c0_i32, %c0_i32_0 : i32, i32
  }
  func.func @transform_6(%arg0: i32) -> (i32, i32) {
    %c0_i32 = arith.constant 0 : i32
    %c0_i32_0 = arith.constant 0 : i32
    %c0_i32_1 = arith.constant 0 : i32
    return %c0_i32, %c0_i32_0 : i32, i32
  }
  func.func @transform_7(%arg0: i32) -> (i32, i32, i32) {
    %c0_i32 = arith.constant 0 : i32
    %c0_i32_0 = arith.constant 0 : i32
    %c0_i32_1 = arith.constant 0 : i32
    return %arg0, %c0_i32, %c0_i32_0 : i32, i32, i32
  }
}

module attributes {stable_mosaic.version = 11 : i64} {
  func.func @_linear_kernel(%arg0: i32, %arg1: memref<16x16xbf16, #tpu.memory_space<vmem>>, %arg2: memref<16x32xbf16, #tpu.memory_space<vmem>>, %arg3: memref<1x32xf32, #tpu.memory_space<vmem>>, %arg4: memref<16x32xbf16, #tpu.memory_space<vmem>>) attributes {dimension_semantics = [#tpu.dimension_semantics<parallel>], iteration_bounds = array<i64: 1>, scalar_prefetch = 0 : i64, scratch_operands = 0 : i64, tpu.core_type = #tpu.core_type<tc>, window_params = [{transform_indices = @transform_0, window_bounds = array<i64: 16, 16>}, {pipeline_mode = #tpu.pipeline_mode<synchronous>, transform_indices = @transform_1, window_bounds = array<i64: 16, 32>}, {pipeline_mode = #tpu.pipeline_mode<synchronous>, transform_indices = @transform_2, window_bounds = array<i64: 1, 32>}, {transform_indices = @transform_3, window_bounds = array<i64: 16, 32>}]} {
    %c0 = arith.constant 0 : index
    %c0_0 = arith.constant 0 : index
    %0 = vector.load %arg1[%c0, %c0_0] : memref<16x16xbf16, #tpu.memory_space<vmem>>, vector<16x16xbf16>
    %c0_1 = arith.constant 0 : index
    %c0_2 = arith.constant 0 : index
    %1 = vector.load %arg2[%c0_1, %c0_2] : memref<16x32xbf16, #tpu.memory_space<vmem>>, vector<16x32xbf16>
    %cst = arith.constant dense<0.000000e+00> : vector<16x32xf32>
    %2 = tpu.matmul %0, %1, %cst {dimension_numbers = #tpu.dot_dimension_numbers<[1], [0], [0], [1], [0, 0, 1, 1], [], []>} : vector<16x16xbf16>, vector<16x32xbf16>, vector<16x32xf32> -> vector<16x32xf32>
    %c0_3 = arith.constant 0 : index
    %c0_4 = arith.constant 0 : index
    %3 = vector.load %arg3[%c0_3, %c0_4] : memref<1x32xf32, #tpu.memory_space<vmem>>, vector<1x32xf32>
    %4 = vector.broadcast %3 : vector<1x32xf32> to vector<16x32xf32>
    %5 = arith.addf %2, %4 : vector<16x32xf32>
    %6 = arith.truncf %5 : vector<16x32xf32> to vector<16x32xbf16>
    %c0_5 = arith.constant 0 : index
    %c0_6 = arith.constant 0 : index
    %7 = vector.load %arg4[%c0_5, %c0_6] : memref<16x32xbf16, #tpu.memory_space<vmem>>, vector<16x32xbf16>
    tpu.vector_store %arg4[%c0_5, %c0_6], %6 {strides = array<i32>} : memref<16x32xbf16, #tpu.memory_space<vmem>>, vector<16x32xbf16>,
    return
  }
  func.func @transform_0(%arg0: i32) -> (i32, i32) {
    %c0_i32 = arith.constant 0 : i32
    %c0_i32_0 = arith.constant 0 : i32
    return %arg0, %c0_i32 : i32, i32
  }
  func.func @transform_1(%arg0: i32) -> (i32, i32) {
    %c0_i32 = arith.constant 0 : i32
    %c0_i32_0 = arith.constant 0 : i32
    %c0_i32_1 = arith.constant 0 : i32
    return %c0_i32, %c0_i32_0 : i32, i32
  }
  func.func @transform_2(%arg0: i32) -> (i32, i32) {
    %c0_i32 = arith.constant 0 : i32
    %c0_i32_0 = arith.constant 0 : i32
    %c0_i32_1 = arith.constant 0 : i32
    return %c0_i32, %c0_i32_0 : i32, i32
  }
  func.func @transform_3(%arg0: i32) -> (i32, i32) {
    %c0_i32 = arith.constant 0 : i32
    %c0_i32_0 = arith.constant 0 : i32
    return %arg0, %c0_i32 : i32, i32
  }
}

module attributes {stable_mosaic.version = 11 : i64} {
  func.func @_ffn_ln_kernel(%arg0: i32, %arg1: memref<16x32xbf16, #tpu.memory_space<vmem>>, %arg2: memref<32x64xbf16, #tpu.memory_space<vmem>>, %arg3: memref<1x64xf32, #tpu.memory_space<vmem>>, %arg4: memref<64x32xbf16, #tpu.memory_space<vmem>>, %arg5: memref<1x32xf32, #tpu.memory_space<vmem>>, %arg6: memref<1x32xf32, #tpu.memory_space<vmem>>, %arg7: memref<1x32xf32, #tpu.memory_space<vmem>>, %arg8: memref<16x32xbf16, #tpu.memory_space<vmem>>) attributes {dimension_semantics = [#tpu.dimension_semantics<parallel>], iteration_bounds = array<i64: 1>, scalar_prefetch = 0 : i64, scratch_operands = 0 : i64, tpu.core_type = #tpu.core_type<tc>, window_params = [{transform_indices = @transform_0, window_bounds = array<i64: 16, 32>}, {pipeline_mode = #tpu.pipeline_mode<synchronous>, transform_indices = @transform_1, window_bounds = array<i64: 32, 64>}, {pipeline_mode = #tpu.pipeline_mode<synchronous>, transform_indices = @transform_2, window_bounds = array<i64: 1, 64>}, {pipeline_mode = #tpu.pipeline_mode<synchronous>, transform_indices = @transform_3, window_bounds = array<i64: 64, 32>}, {pipeline_mode = #tpu.pipeline_mode<synchronous>, transform_indices = @transform_4, window_bounds = array<i64: 1, 32>}, {pipeline_mode = #tpu.pipeline_mode<synchronous>, transform_indices = @transform_5, window_bounds = array<i64: 1, 32>}, {pipeline_mode = #tpu.pipeline_mode<synchronous>, transform_indices = @transform_6, window_bounds = array<i64: 1, 32>}, {transform_indices = @transform_7, window_bounds = array<i64: 16, 32>}]} {
    %c0 = arith.constant 0 : index
    %c0_0 = arith.constant 0 : index
    %0 = vector.load %arg1[%c0, %c0_0] : memref<16x32xbf16, #tpu.memory_space<vmem>>, vector<16x32xbf16>
    %c0_1 = arith.constant 0 : index
    %c0_2 = arith.constant 0 : index
    %1 = vector.load %arg2[%c0_1, %c0_2] : memref<32x64xbf16, #tpu.memory_space<vmem>>, vector<32x64xbf16>
    %cst = arith.constant dense<0.000000e+00> : vector<16x64xf32>
    %2 = tpu.matmul %0, %1, %cst {dimension_numbers = #tpu.dot_dimension_numbers<[1], [0], [0], [1], [0, 0, 1, 1], [], []>} : vector<16x32xbf16>, vector<32x64xbf16>, vector<16x64xf32> -> vector<16x64xf32>
    %c0_3 = arith.constant 0 : index
    %c0_4 = arith.constant 0 : index
    %3 = vector.load %arg3[%c0_3, %c0_4] : memref<1x64xf32, #tpu.memory_space<vmem>>, vector<1x64xf32>
    %4 = vector.broadcast %3 : vector<1x64xf32> to vector<16x64xf32>
    %5 = arith.addf %2, %4 : vector<16x64xf32>
    %cst_5 = arith.constant 0.000000e+00 : f32
    %6 = vector.broadcast %cst_5 : f32 to vector<16x64xf32>
    %7 = arith.maximumf %5, %6 : vector<16x64xf32>
    %8 = arith.truncf %7 : vector<16x64xf32> to vector<16x64xbf16>
    %c0_6 = arith.constant 0 : index
    %c0_7 = arith.constant 0 : index
    %9 = vector.load %arg4[%c0_6, %c0_7] : memref<64x32xbf16, #tpu.memory_space<vmem>>, vector<64x32xbf16>
    %cst_8 = arith.constant dense<0.000000e+00> : vector<16x32xf32>
    %10 = tpu.matmul %8, %9, %cst_8 {dimension_numbers = #tpu.dot_dimension_numbers<[1], [0], [0], [1], [0, 0, 1, 1], [], []>} : vector<16x64xbf16>, vector<64x32xbf16>, vector<16x32xf32> -> vector<16x32xf32>
    %c0_9 = arith.constant 0 : index
    %c0_10 = arith.constant 0 : index
    %11 = vector.load %arg5[%c0_9, %c0_10] : memref<1x32xf32, #tpu.memory_space<vmem>>, vector<1x32xf32>
    %12 = vector.broadcast %11 : vector<1x32xf32> to vector<16x32xf32>
    %13 = arith.addf %10, %12 : vector<16x32xf32>
    %14 = arith.extf %0 : vector<16x32xbf16> to vector<16x32xf32>
    %15 = arith.addf %13, %14 : vector<16x32xf32>
    %cst_11 = arith.constant dense<0.000000e+00> : vector<16xf32>
    %16 = vector.multi_reduction <add>, %15, %cst_11 [1] : vector<16x32xf32> to vector<16xf32>
    %17 = vector.shape_cast %16 : vector<16xf32> to vector<16x1xf32>
    %cst_12 = arith.constant 3.200000e+01 : f32
    %18 = vector.broadcast %cst_12 : f32 to vector<16x1xf32>
    %19 = arith.divf %17, %18 : vector<16x1xf32>
    %20 = vector.broadcast %19 : vector<16x1xf32> to vector<16x32xf32>
    %21 = arith.subf %15, %20 : vector<16x32xf32>
    %22 = arith.mulf %21, %21 : vector<16x32xf32>
    %cst_13 = arith.constant dense<0.000000e+00> : vector<16xf32>
    %23 = vector.multi_reduction <add>, %22, %cst_13 [1] : vector<16x32xf32> to vector<16xf32>
    %24 = vector.shape_cast %23 : vector<16xf32> to vector<16x1xf32>
    %cst_14 = arith.constant 3.200000e+01 : f32
    %25 = vector.broadcast %cst_14 : f32 to vector<16x1xf32>
    %26 = arith.divf %24, %25 : vector<16x1xf32>
    %cst_15 = arith.constant 9.99999974E-6 : f32
    %27 = vector.broadcast %cst_15 : f32 to vector<16x1xf32>
    %28 = arith.addf %26, %27 : vector<16x1xf32>
    %29 = math.rsqrt %28 : vector<16x1xf32>
    %30 = vector.broadcast %29 : vector<16x1xf32> to vector<16x32xf32>
    %31 = arith.mulf %21, %30 : vector<16x32xf32>
    %c0_16 = arith.constant 0 : index
    %c0_17 = arith.constant 0 : index
    %32 = vector.load %arg6[%c0_16, %c0_17] : memref<1x32xf32, #tpu.memory_space<vmem>>, vector<1x32xf32>
    %33 = vector.broadcast %32 : vector<1x32xf32> to vector<16x32xf32>
    %34 = arith.mulf %31, %33 : vector<16x32xf32>
    %c0_18 = arith.constant 0 : index
    %c0_19 = arith.constant 0 : index
    %35 = vector.load %arg7[%c0_18, %c0_19] : memref<1x32xf32, #tpu.memory_space<vmem>>, vector<1x32xf32>
    %36 = vector.broadcast %35 : vector<1x32xf32> to vector<16x32xf32>
    %37 = arith.addf %34, %36 : vector<16x32xf32>
    %38 = arith.truncf %37 : vector<16x32xf32> to vector<16x32xbf16>
    %c0_20 = arith.constant 0 : index
    %c0_21 = arith.constant 0 : index
    %39 = vector.load %arg8[%c0_20, %c0_21] : memref<16x32xbf16, #tpu.memory_space<vmem>>, vector<16x32xbf16>
    tpu.vector_store %arg8[%c0_20, %c0_21], %38 {strides = array<i32>} : memref<16x32xbf16, #tpu.memory_space<vmem>>, vector<16x32xbf16>,
    return
  }
  func.func @transform_0(%arg0: i32) -> (i32, i32) {
    %c0_i32 = arith.constant 0 : i32
    %c0_i32_0 = arith.constant 0 : i32
    return %arg0, %c0_i32 : i32, i32
  }
  func.func @transform_1(%arg0: i32) -> (i32, i32) {
    %c0_i32 = arith.constant 0 : i32
    %c0_i32_0 = arith.constant 0 : i32
    %c0_i32_1 = arith.constant 0 : i32
    return %c0_i32, %c0_i32_0 : i32, i32
  }
  func.func @transform_2(%arg0: i32) -> (i32, i32) {
    %c0_i32 = arith.constant 0 : i32
    %c0_i32_0 = arith.constant 0 : i32
    %c0_i32_1 = arith.constant 0 : i32
    return %c0_i32, %c0_i32_0 : i32, i32
  }
  func.func @transform_3(%arg0: i32) -> (i32, i32) {
    %c0_i32 = arith.constant 0 : i32
    %c0_i32_0 = arith.constant 0 : i32
    %c0_i32_1 = arith.constant 0 : i32
    return %c0_i32, %c0_i32_0 : i32, i32
  }
  func.func @transform_4(%arg0: i32) -> (i32, i32) {
    %c0_i32 = arith.constant 0 : i32
    %c0_i32_0 = arith.constant 0 : i32
    %c0_i32_1 = arith.constant 0 : i32
    return %c0_i32, %c0_i32_0 : i32, i32
  }
  func.func @transform_5(%arg0: i32) -> (i32, i32) {
    %c0_i32 = arith.constant 0 : i32
    %c0_i32_0 = arith.constant 0 : i32
    %c0_i32_1 = arith.constant 0 : i32
    return %c0_i32, %c0_i32_0 : i32, i32
  }
  func.func @transform_6(%arg0: i32) -> (i32, i32) {
    %c0_i32 = arith.constant 0 : i32
    %c0_i32_0 = arith.constant 0 : i32
    %c0_i32_1 = arith.constant 0 : i32
    return %c0_i32, %c0_i32_0 : i32, i32
  }
  func.func @transform_7(%arg0: i32) -> (i32, i32) {
    %c0_i32 = arith.constant 0 : i32
    %c0_i32_0 = arith.constant 0 : i32
    return %arg0, %c0_i32 : i32, i32
  }
}

module attributes {stable_mosaic.version = 11 : i64} {
  func.func @_mha_kernel(%arg0: i32, %arg1: memref<1x8x32xbf16, #tpu.memory_space<vmem>>, %arg2: memref<32x96xbf16, #tpu.memory_space<vmem>>, %arg3: memref<1x96xf32, #tpu.memory_space<vmem>>, %arg4: memref<32x32xbf16, #tpu.memory_space<vmem>>, %arg5: memref<1x32xf32, #tpu.memory_space<vmem>>, %arg6: memref<1x32xf32, #tpu.memory_space<vmem>>, %arg7: memref<1x32xf32, #tpu.memory_space<vmem>>, %arg8: memref<1x8x32xbf16, #tpu.memory_space<vmem>>) attributes {dimension_semantics = [#tpu.dimension_semantics<parallel>], iteration_bounds = array<i64: 2>, scalar_prefetch = 0 : i64, scratch_operands = 0 : i64, tpu.core_type = #tpu.core_type<tc>, window_params = [{transform_indices = @transform_0, window_bounds = array<i64: 1, 8, 32>}, {pipeline_mode = #tpu.pipeline_mode<synchronous>, transform_indices = @transform_1, window_bounds = array<i64: 32, 96>}, {pipeline_mode = #tpu.pipeline_mode<synchronous>, transform_indices = @transform_2, window_bounds = array<i64: 1, 96>}, {pipeline_mode = #tpu.pipeline_mode<synchronous>, transform_indices = @transform_3, window_bounds = array<i64: 32, 32>}, {pipeline_mode = #tpu.pipeline_mode<synchronous>, transform_indices = @transform_4, window_bounds = array<i64: 1, 32>}, {pipeline_mode = #tpu.pipeline_mode<synchronous>, transform_indices = @transform_5, window_bounds = array<i64: 1, 32>}, {pipeline_mode = #tpu.pipeline_mode<synchronous>, transform_indices = @transform_6, window_bounds = array<i64: 1, 32>}, {transform_indices = @transform_7, window_bounds = array<i64: 1, 8, 32>}]} {
    %c0 = arith.constant 0 : index
    %c0_0 = arith.constant 0 : index
    %c0_1 = arith.constant 0 : index
    %0 = vector.load %arg1[%c0, %c0_0, %c0_1] : memref<1x8x32xbf16, #tpu.memory_space<vmem>>, vector<1x8x32xbf16>
    %1 = vector.shape_cast %0 : vector<1x8x32xbf16> to vector<8x32xbf16>
    %c0_2 = arith.constant 0 : index
    %c0_3 = arith.constant 0 : index
    %2 = vector.load %arg2[%c0_2, %c0_3] : memref<32x96xbf16, #tpu.memory_space<vmem>>, vector<32x96xbf16>
    %cst = arith.constant dense<0.000000e+00> : vector<8x96xf32>
    %3 = tpu.matmul %1, %2, %cst {dimension_numbers = #tpu.dot_dimension_numbers<[1], [0], [0], [1], [0, 0, 1, 1], [], []>} : vector<8x32xbf16>, vector<32x96xbf16>, vector<8x96xf32> -> vector<8x96xf32>
    %c0_4 = arith.constant 0 : index
    %c0_5 = arith.constant 0 : index
    %4 = vector.load %arg3[%c0_4, %c0_5] : memref<1x96xf32, #tpu.memory_space<vmem>>, vector<1x96xf32>
    %5 = vector.broadcast %4 : vector<1x96xf32> to vector<8x96xf32>
    %6 = arith.addf %3, %5 : vector<8x96xf32>
    %7 = arith.truncf %6 : vector<8x96xf32> to vector<8x96xbf16>
    %8 = vector.extract_strided_slice %7 {offsets = [0, 0], sizes = [8, 8], strides = [1, 1]} : vector<8x96xbf16> to vector<8x8xbf16>
    %9 = vector.extract_strided_slice %7 {offsets = [0, 32], sizes = [8, 8], strides = [1, 1]} : vector<8x96xbf16> to vector<8x8xbf16>
    %10 = vector.extract_strided_slice %7 {offsets = [0, 64], sizes = [8, 8], strides = [1, 1]} : vector<8x96xbf16> to vector<8x8xbf16>
    %cst_6 = arith.constant dense<0.000000e+00> : vector<8x8xf32>
    %11 = tpu.matmul %8, %9, %cst_6 {dimension_numbers = #tpu.dot_dimension_numbers<[1], [1], [0], [0], [0, 0, 1, 0], [], []>} : vector<8x8xbf16>, vector<8x8xbf16>, vector<8x8xf32> -> vector<8x8xf32>
    %cst_7 = arith.constant 0.353553385 : f32
    %12 = vector.broadcast %cst_7 : f32 to vector<8x8xf32>
    %13 = arith.mulf %11, %12 : vector<8x8xf32>
    %cst_8 = arith.constant dense<0xFF800000> : vector<8xf32>
    %14 = vector.multi_reduction <maximumf>, %13, %cst_8 [1] : vector<8x8xf32> to vector<8xf32>
    %15 = vector.shape_cast %14 : vector<8xf32> to vector<8x1xf32>
    %16 = vector.broadcast %15 : vector<8x1xf32> to vector<8x8xf32>
    %17 = arith.subf %13, %16 : vector<8x8xf32>
    %18 = math.exp %17 : vector<8x8xf32>
    %cst_9 = arith.constant dense<0.000000e+00> : vector<8xf32>
    %19 = vector.multi_reduction <add>, %18, %cst_9 [1] : vector<8x8xf32> to vector<8xf32>
    %20 = vector.shape_cast %19 : vector<8xf32> to vector<8x1xf32>
    %21 = tpu.reciprocal %20 {approx = true} : vector<8x1xf32> -> vector<8x1xf32>
    %22 = vector.broadcast %21 : vector<8x1xf32> to vector<8x8xf32>
    %23 = arith.mulf %18, %22 : vector<8x8xf32>
    %24 = arith.truncf %23 : vector<8x8xf32> to vector<8x8xbf16>
    %cst_10 = arith.constant dense<0.000000e+00> : vector<8x8xf32>
    %25 = tpu.matmul %24, %10, %cst_10 {dimension_numbers = #tpu.dot_dimension_numbers<[1], [0], [0], [1], [0, 0, 1, 1], [], []>} : vector<8x8xbf16>, vector<8x8xbf16>, vector<8x8xf32> -> vector<8x8xf32>
    %26 = vector.extract_strided_slice %7 {offsets = [0, 8], sizes = [8, 8], strides = [1, 1]} : vector<8x96xbf16> to vector<8x8xbf16>
    %27 = vector.extract_strided_slice %7 {offsets = [0, 40], sizes = [8, 8], strides = [1, 1]} : vector<8x96xbf16> to vector<8x8xbf16>
    %28 = vector.extract_strided_slice %7 {offsets = [0, 72], sizes = [8, 8], strides = [1, 1]} : vector<8x96xbf16> to vector<8x8xbf16>
    %cst_11 = arith.constant dense<0.000000e+00> : vector<8x8xf32>
    %29 = tpu.matmul %26, %27, %cst_11 {dimension_numbers = #tpu.dot_dimension_numbers<[1], [1], [0], [0], [0, 0, 1, 0], [], []>} : vector<8x8xbf16>, vector<8x8xbf16>, vector<8x8xf32> -> vector<8x8xf32>
    %cst_12 = arith.constant 0.353553385 : f32
    %30 = vector.broadcast %cst_12 : f32 to vector<8x8xf32>
    %31 = arith.mulf %29, %30 : vector<8x8xf32>
    %cst_13 = arith.constant dense<0xFF800000> : vector<8xf32>
    %32 = vector.multi_reduction <maximumf>, %31, %cst_13 [1] : vector<8x8xf32> to vector<8xf32>
    %33 = vector.shape_cast %32 : vector<8xf32> to vector<8x1xf32>
    %34 = vector.broadcast %33 : vector<8x1xf32> to vector<8x8xf32>
    %35 = arith.subf %31, %34 : vector<8x8xf32>
    %36 = math.exp %35 : vector<8x8xf32>
    %cst_14 = arith.constant dense<0.000000e+00> : vector<8xf32>
    %37 = vector.multi_reduction <add>, %36, %cst_14 [1] : vector<8x8xf32> to vector<8xf32>
    %38 = vector.shape_cast %37 : vector<8xf32> to vector<8x1xf32>
    %39 = tpu.reciprocal %38 {approx = true} : vector<8x1xf32> -> vector<8x1xf32>
    %40 = vector.broadcast %39 : vector<8x1xf32> to vector<8x8xf32>
    %41 = arith.mulf %36, %40 : vector<8x8xf32>
    %42 = arith.truncf %41 : vector<8x8xf32> to vector<8x8xbf16>
    %cst_15 = arith.constant dense<0.000000e+00> : vector<8x8xf32>
    %43 = tpu.matmul %42, %28, %cst_15 {dimension_numbers = #tpu.dot_dimension_numbers<[1], [0], [0], [1], [0, 0, 1, 1], [], []>} : vector<8x8xbf16>, vector<8x8xbf16>, vector<8x8xf32> -> vector<8x8xf32>
    %44 = vector.extract_strided_slice %7 {offsets = [0, 16], sizes = [8, 8], strides = [1, 1]} : vector<8x96xbf16> to vector<8x8xbf16>
    %45 = vector.extract_strided_slice %7 {offsets = [0, 48], sizes = [8, 8], strides = [1, 1]} : vector<8x96xbf16> to vector<8x8xbf16>
    %46 = vector.extract_strided_slice %7 {offsets = [0, 80], sizes = [8, 8], strides = [1, 1]} : vector<8x96xbf16> to vector<8x8xbf16>
    %cst_16 = arith.constant dense<0.000000e+00> : vector<8x8xf32>
    %47 = tpu.matmul %44, %45, %cst_16 {dimension_numbers = #tpu.dot_dimension_numbers<[1], [1], [0], [0], [0, 0, 1, 0], [], []>} : vector<8x8xbf16>, vector<8x8xbf16>, vector<8x8xf32> -> vector<8x8xf32>
    %cst_17 = arith.constant 0.353553385 : f32
    %48 = vector.broadcast %cst_17 : f32 to vector<8x8xf32>
    %49 = arith.mulf %47, %48 : vector<8x8xf32>
    %cst_18 = arith.constant dense<0xFF800000> : vector<8xf32>
    %50 = vector.multi_reduction <maximumf>, %49, %cst_18 [1] : vector<8x8xf32> to vector<8xf32>
    %51 = vector.shape_cast %50 : vector<8xf32> to vector<8x1xf32>
    %52 = vector.broadcast %51 : vector<8x1xf32> to vector<8x8xf32>
    %53 = arith.subf %49, %52 : vector<8x8xf32>
    %54 = math.exp %53 : vector<8x8xf32>
    %cst_19 = arith.constant dense<0.000000e+00> : vector<8xf32>
    %55 = vector.multi_reduction <add>, %54, %cst_19 [1] : vector<8x8xf32> to vector<8xf32>
    %56 = vector.shape_cast %55 : vector<8xf32> to vector<8x1xf32>
    %57 = tpu.reciprocal %56 {approx = true} : vector<8x1xf32> -> vector<8x1xf32>
    %58 = vector.broadcast %57 : vector<8x1xf32> to vector<8x8xf32>
    %59 = arith.mulf %54, %58 : vector<8x8xf32>
    %60 = arith.truncf %59 : vector<8x8xf32> to vector<8x8xbf16>
    %cst_20 = arith.constant dense<0.000000e+00> : vector<8x8xf32>
    %61 = tpu.matmul %60, %46, %cst_20 {dimension_numbers = #tpu.dot_dimension_numbers<[1], [0], [0], [1], [0, 0, 1, 1], [], []>} : vector<8x8xbf16>, vector<8x8xbf16>, vector<8x8xf32> -> vector<8x8xf32>
    %62 = vector.extract_strided_slice %7 {offsets = [0, 24], sizes = [8, 8], strides = [1, 1]} : vector<8x96xbf16> to vector<8x8xbf16>
    %63 = vector.extract_strided_slice %7 {offsets = [0, 56], sizes = [8, 8], strides = [1, 1]} : vector<8x96xbf16> to vector<8x8xbf16>
    %64 = vector.extract_strided_slice %7 {offsets = [0, 88], sizes = [8, 8], strides = [1, 1]} : vector<8x96xbf16> to vector<8x8xbf16>
    %cst_21 = arith.constant dense<0.000000e+00> : vector<8x8xf32>
    %65 = tpu.matmul %62, %63, %cst_21 {dimension_numbers = #tpu.dot_dimension_numbers<[1], [1], [0], [0], [0, 0, 1, 0], [], []>} : vector<8x8xbf16>, vector<8x8xbf16>, vector<8x8xf32> -> vector<8x8xf32>
    %cst_22 = arith.constant 0.353553385 : f32
    %66 = vector.broadcast %cst_22 : f32 to vector<8x8xf32>
    %67 = arith.mulf %65, %66 : vector<8x8xf32>
    %cst_23 = arith.constant dense<0xFF800000> : vector<8xf32>
    %68 = vector.multi_reduction <maximumf>, %67, %cst_23 [1] : vector<8x8xf32> to vector<8xf32>
    %69 = vector.shape_cast %68 : vector<8xf32> to vector<8x1xf32>
    %70 = vector.broadcast %69 : vector<8x1xf32> to vector<8x8xf32>
    %71 = arith.subf %67, %70 : vector<8x8xf32>
    %72 = math.exp %71 : vector<8x8xf32>
    %cst_24 = arith.constant dense<0.000000e+00> : vector<8xf32>
    %73 = vector.multi_reduction <add>, %72, %cst_24 [1] : vector<8x8xf32> to vector<8xf32>
    %74 = vector.shape_cast %73 : vector<8xf32> to vector<8x1xf32>
    %75 = tpu.reciprocal %74 {approx = true} : vector<8x1xf32> -> vector<8x1xf32>
    %76 = vector.broadcast %75 : vector<8x1xf32> to vector<8x8xf32>
    %77 = arith.mulf %72, %76 : vector<8x8xf32>
    %78 = arith.truncf %77 : vector<8x8xf32> to vector<8x8xbf16>
    %cst_25 = arith.constant dense<0.000000e+00> : vector<8x8xf32>
    %79 = tpu.matmul %78, %64, %cst_25 {dimension_numbers = #tpu.dot_dimension_numbers<[1], [0], [0], [1], [0, 0, 1, 1], [], []>} : vector<8x8xbf16>, vector<8x8xbf16>, vector<8x8xf32> -> vector<8x8xf32>
    %80 = tpu.concatenate %25, %43, %61, %79 in 1 : vector<8x8xf32>, vector<8x8xf32>, vector<8x8xf32>, vector<8x8xf32> -> vector<8x32xf32>
    %81 = arith.truncf %80 : vector<8x32xf32> to vector<8x32xbf16>
    %c0_26 = arith.constant 0 : index
    %c0_27 = arith.constant 0 : index
    %82 = vector.load %arg4[%c0_26, %c0_27] : memref<32x32xbf16, #tpu.memory_space<vmem>>, vector<32x32xbf16>
    %cst_28 = arith.constant dense<0.000000e+00> : vector<8x32xf32>
    %83 = tpu.matmul %81, %82, %cst_28 {dimension_numbers = #tpu.dot_dimension_numbers<[1], [0], [0], [1], [0, 0, 1, 1], [], []>} : vector<8x32xbf16>, vector<32x32xbf16>, vector<8x32xf32> -> vector<8x32xf32>
    %c0_29 = arith.constant 0 : index
    %c0_30 = arith.constant 0 : index
    %84 = vector.load %arg5[%c0_29, %c0_30] : memref<1x32xf32, #tpu.memory_space<vmem>>, vector<1x32xf32>
    %85 = vector.broadcast %84 : vector<1x32xf32> to vector<8x32xf32>
    %86 = arith.addf %83, %85 : vector<8x32xf32>
    %87 = arith.extf %1 : vector<8x32xbf16> to vector<8x32xf32>
    %88 = arith.addf %86, %87 : vector<8x32xf32>
    %cst_31 = arith.constant dense<0.000000e+00> : vector<8xf32>
    %89 = vector.multi_reduction <add>, %88, %cst_31 [1] : vector<8x32xf32> to vector<8xf32>
    %90 = vector.shape_cast %89 : vector<8xf32> to vector<8x1xf32>
    %cst_32 = arith.constant 3.200000e+01 : f32
    %91 = vector.broadcast %cst_32 : f32 to vector<8x1xf32>
    %92 = arith.divf %90, %91 : vector<8x1xf32>
    %93 = vector.broadcast %92 : vector<8x1xf32> to vector<8x32xf32>
    %94 = arith.subf %88, %93 : vector<8x32xf32>
    %95 = arith.mulf %94, %94 : vector<8x32xf32>
    %cst_33 = arith.constant dense<0.000000e+00> : vector<8xf32>
    %96 = vector.multi_reduction <add>, %95, %cst_33 [1] : vector<8x32xf32> to vector<8xf32>
    %97 = vector.shape_cast %96 : vector<8xf32> to vector<8x1xf32>
    %cst_34 = arith.constant 3.200000e+01 : f32
    %98 = vector.broadcast %cst_34 : f32 to vector<8x1xf32>
    %99 = arith.divf %97, %98 : vector<8x1xf32>
    %cst_35 = arith.constant 9.99999974E-6 : f32
    %100 = vector.broadcast %cst_35 : f32 to vector<8x1xf32>
    %101 = arith.addf %99, %100 : vector<8x1xf32>
    %102 = math.rsqrt %101 : vector<8x1xf32>
    %103 = vector.broadcast %102 : vector<8x1xf32> to vector<8x32xf32>
    %104 = arith.mulf %94, %103 : vector<8x32xf32>
    %c0_36 = arith.constant 0 : index
    %c0_37 = arith.constant 0 : index
    %105 = vector.load %arg6[%c0_36, %c0_37] : memref<1x32xf32, #tpu.memory_space<vmem>>, vector<1x32xf32>
    %106 = vector.broadcast %105 : vector<1x32xf32> to vector<8x32xf32>
    %107 = arith.mulf %104, %106 : vector<8x32xf32>
    %c0_38 = arith.constant 0 : index
    %c0_39 = arith.constant 0 : index
    %108 = vector.load %arg7[%c0_38, %c0_39] : memref<1x32xf32, #tpu.memory_space<vmem>>, vector<1x32xf32>
    %109 = vector.broadcast %108 : vector<1x32xf32> to vector<8x32xf32>
    %110 = arith.addf %107, %109 : vector<8x32xf32>
    %111 = arith.truncf %110 : vector<8x32xf32> to vector<8x32xbf16>
    %c0_40 = arith.constant 0 : index
    %c0_41 = arith.constant 0 : index
    %c0_42 = arith.constant 0 : index
    %112 = vector.load %arg8[%c0_40, %c0_41, %c0_42] : memref<1x8x32xbf16, #tpu.memory_space<vmem>>, vector<1x8x32xbf16>
    %113 = vector.shape_cast %112 : vector<1x8x32xbf16> to vector<8x32xbf16>
    %114 = vector.shape_cast %111 : vector<8x32xbf16> to vector<1x8x32xbf16>
    tpu.vector_store %arg8[%c0_40, %c0_41, %c0_42], %114 {strides = array<i32>} : memref<1x8x32xbf16, #tpu.memory_space<vmem>>, vector<1x8x32xbf16>,
    return
  }
  func.func @transform_0(%arg0: i32) -> (i32, i32, i32) {
    %c0_i32 = arith.constant 0 : i32
    %c0_i32_0 = arith.constant 0 : i32
    %c0_i32_1 = arith.constant 0 : i32
    return %arg0, %c0_i32, %c0_i32_0 : i32, i32, i32
  }
  func.func @transform_1(%arg0: i32) -> (i32, i32) {
    %c0_i32 = arith.constant 0 : i32
    %c0_i32_0 = arith.constant 0 : i32
    %c0_i32_1 = arith.constant 0 : i32
    return %c0_i32, %c0_i32_0 : i32, i32
  }
  func.func @transform_2(%arg0: i32) -> (i32, i32) {
    %c0_i32 = arith.constant 0 : i32
    %c0_i32_0 = arith.constant 0 : i32
    %c0_i32_1 = arith.constant 0 : i32
    return %c0_i32, %c0_i32_0 : i32, i32
  }
  func.func @transform_3(%arg0: i32) -> (i32, i32) {
    %c0_i32 = arith.constant 0 : i32
    %c0_i32_0 = arith.constant 0 : i32
    %c0_i32_1 = arith.constant 0 : i32
    return %c0_i32, %c0_i32_0 : i32, i32
  }
  func.func @transform_4(%arg0: i32) -> (i32, i32) {
    %c0_i32 = arith.constant 0 : i32
    %c0_i32_0 = arith.constant 0 : i32
    %c0_i32_1 = arith.constant 0 : i32
    return %c0_i32, %c0_i32_0 : i32, i32
  }
  func.func @transform_5(%arg0: i32) -> (i32, i32) {
    %c0_i32 = arith.constant 0 : i32
    %c0_i32_0 = arith.constant 0 : i32
    %c0_i32_1 = arith.constant 0 : i32
    return %c0_i32, %c0_i32_0 : i32, i32
  }
  func.func @transform_6(%arg0: i32) -> (i32, i32) {
    %c0_i32 = arith.constant 0 : i32
    %c0_i32_0 = arith.constant 0 : i32
    %c0_i32_1 = arith.constant 0 : i32
    return %c0_i32, %c0_i32_0 : i32, i32
  }
  func.func @transform_7(%arg0: i32) -> (i32, i32, i32) {
    %c0_i32 = arith.constant 0 : i32
    %c0_i32_0 = arith.constant 0 : i32
    %c0_i32_1 = arith.constant 0 : i32
    return %arg0, %c0_i32, %c0_i32_0 : i32, i32, i32
  }
}

module attributes {stable_mosaic.version = 11 : i64} {
  func.func @_ffn_ln_kernel(%arg0: i32, %arg1: memref<16x32xbf16, #tpu.memory_space<vmem>>, %arg2: memref<32x64xbf16, #tpu.memory_space<vmem>>, %arg3: memref<1x64xf32, #tpu.memory_space<vmem>>, %arg4: memref<64x32xbf16, #tpu.memory_space<vmem>>, %arg5: memref<1x32xf32, #tpu.memory_space<vmem>>, %arg6: memref<1x32xf32, #tpu.memory_space<vmem>>, %arg7: memref<1x32xf32, #tpu.memory_space<vmem>>, %arg8: memref<16x32xbf16, #tpu.memory_space<vmem>>) attributes {dimension_semantics = [#tpu.dimension_semantics<parallel>], iteration_bounds = array<i64: 1>, scalar_prefetch = 0 : i64, scratch_operands = 0 : i64, tpu.core_type = #tpu.core_type<tc>, window_params = [{transform_indices = @transform_0, window_bounds = array<i64: 16, 32>}, {pipeline_mode = #tpu.pipeline_mode<synchronous>, transform_indices = @transform_1, window_bounds = array<i64: 32, 64>}, {pipeline_mode = #tpu.pipeline_mode<synchronous>, transform_indices = @transform_2, window_bounds = array<i64: 1, 64>}, {pipeline_mode = #tpu.pipeline_mode<synchronous>, transform_indices = @transform_3, window_bounds = array<i64: 64, 32>}, {pipeline_mode = #tpu.pipeline_mode<synchronous>, transform_indices = @transform_4, window_bounds = array<i64: 1, 32>}, {pipeline_mode = #tpu.pipeline_mode<synchronous>, transform_indices = @transform_5, window_bounds = array<i64: 1, 32>}, {pipeline_mode = #tpu.pipeline_mode<synchronous>, transform_indices = @transform_6, window_bounds = array<i64: 1, 32>}, {transform_indices = @transform_7, window_bounds = array<i64: 16, 32>}]} {
    %c0 = arith.constant 0 : index
    %c0_0 = arith.constant 0 : index
    %0 = vector.load %arg1[%c0, %c0_0] : memref<16x32xbf16, #tpu.memory_space<vmem>>, vector<16x32xbf16>
    %c0_1 = arith.constant 0 : index
    %c0_2 = arith.constant 0 : index
    %1 = vector.load %arg2[%c0_1, %c0_2] : memref<32x64xbf16, #tpu.memory_space<vmem>>, vector<32x64xbf16>
    %cst = arith.constant dense<0.000000e+00> : vector<16x64xf32>
    %2 = tpu.matmul %0, %1, %cst {dimension_numbers = #tpu.dot_dimension_numbers<[1], [0], [0], [1], [0, 0, 1, 1], [], []>} : vector<16x32xbf16>, vector<32x64xbf16>, vector<16x64xf32> -> vector<16x64xf32>
    %c0_3 = arith.constant 0 : index
    %c0_4 = arith.constant 0 : index
    %3 = vector.load %arg3[%c0_3, %c0_4] : memref<1x64xf32, #tpu.memory_space<vmem>>, vector<1x64xf32>
    %4 = vector.broadcast %3 : vector<1x64xf32> to vector<16x64xf32>
    %5 = arith.addf %2, %4 : vector<16x64xf32>
    %cst_5 = arith.constant 0.000000e+00 : f32
    %6 = vector.broadcast %cst_5 : f32 to vector<16x64xf32>
    %7 = arith.maximumf %5, %6 : vector<16x64xf32>
    %8 = arith.truncf %7 : vector<16x64xf32> to vector<16x64xbf16>
    %c0_6 = arith.constant 0 : index
    %c0_7 = arith.constant 0 : index
    %9 = vector.load %arg4[%c0_6, %c0_7] : memref<64x32xbf16, #tpu.memory_space<vmem>>, vector<64x32xbf16>
    %cst_8 = arith.constant dense<0.000000e+00> : vector<16x32xf32>
    %10 = tpu.matmul %8, %9, %cst_8 {dimension_numbers = #tpu.dot_dimension_numbers<[1], [0], [0], [1], [0, 0, 1, 1], [], []>} : vector<16x64xbf16>, vector<64x32xbf16>, vector<16x32xf32> -> vector<16x32xf32>
    %c0_9 = arith.constant 0 : index
    %c0_10 = arith.constant 0 : index
    %11 = vector.load %arg5[%c0_9, %c0_10] : memref<1x32xf32, #tpu.memory_space<vmem>>, vector<1x32xf32>
    %12 = vector.broadcast %11 : vector<1x32xf32> to vector<16x32xf32>
    %13 = arith.addf %10, %12 : vector<16x32xf32>
    %14 = arith.extf %0 : vector<16x32xbf16> to vector<16x32xf32>
    %15 = arith.addf %13, %14 : vector<16x32xf32>
    %cst_11 = arith.constant dense<0.000000e+00> : vector<16xf32>
    %16 = vector.multi_reduction <add>, %15, %cst_11 [1] : vector<16x32xf32> to vector<16xf32>
    %17 = vector.shape_cast %16 : vector<16xf32> to vector<16x1xf32>
    %cst_12 = arith.constant 3.200000e+01 : f32
    %18 = vector.broadcast %cst_12 : f32 to vector<16x1xf32>
    %19 = arith.divf %17, %18 : vector<16x1xf32>
    %20 = vector.broadcast %19 : vector<16x1xf32> to vector<16x32xf32>
    %21 = arith.subf %15, %20 : vector<16x32xf32>
    %22 = arith.mulf %21, %21 : vector<16x32xf32>
    %cst_13 = arith.constant dense<0.000000e+00> : vector<16xf32>
    %23 = vector.multi_reduction <add>, %22, %cst_13 [1] : vector<16x32xf32> to vector<16xf32>
    %24 = vector.shape_cast %23 : vector<16xf32> to vector<16x1xf32>
    %cst_14 = arith.constant 3.200000e+01 : f32
    %25 = vector.broadcast %cst_14 : f32 to vector<16x1xf32>
    %26 = arith.divf %24, %25 : vector<16x1xf32>
    %cst_15 = arith.constant 9.99999974E-6 : f32
    %27 = vector.broadcast %cst_15 : f32 to vector<16x1xf32>
    %28 = arith.addf %26, %27 : vector<16x1xf32>
    %29 = math.rsqrt %28 : vector<16x1xf32>
    %30 = vector.broadcast %29 : vector<16x1xf32> to vector<16x32xf32>
    %31 = arith.mulf %21, %30 : vector<16x32xf32>
    %c0_16 = arith.constant 0 : index
    %c0_17 = arith.constant 0 : index
    %32 = vector.load %arg6[%c0_16, %c0_17] : memref<1x32xf32, #tpu.memory_space<vmem>>, vector<1x32xf32>
    %33 = vector.broadcast %32 : vector<1x32xf32> to vector<16x32xf32>
    %34 = arith.mulf %31, %33 : vector<16x32xf32>
    %c0_18 = arith.constant 0 : index
    %c0_19 = arith.constant 0 : index
    %35 = vector.load %arg7[%c0_18, %c0_19] : memref<1x32xf32, #tpu.memory_space<vmem>>, vector<1x32xf32>
    %36 = vector.broadcast %35 : vector<1x32xf32> to vector<16x32xf32>
    %37 = arith.addf %34, %36 : vector<16x32xf32>
    %38 = arith.truncf %37 : vector<16x32xf32> to vector<16x32xbf16>
    %c0_20 = arith.constant 0 : index
    %c0_21 = arith.constant 0 : index
    %39 = vector.load %arg8[%c0_20, %c0_21] : memref<16x32xbf16, #tpu.memory_space<vmem>>, vector<16x32xbf16>
    tpu.vector_store %arg8[%c0_20, %c0_21], %38 {strides = array<i32>} : memref<16x32xbf16, #tpu.memory_space<vmem>>, vector<16x32xbf16>,
    return
  }
  func.func @transform_0(%arg0: i32) -> (i32, i32) {
    %c0_i32 = arith.constant 0 : i32
    %c0_i32_0 = arith.constant 0 : i32
    return %arg0, %c0_i32 : i32, i32
  }
  func.func @transform_1(%arg0: i32) -> (i32, i32) {
    %c0_i32 = arith.constant 0 : i32
    %c0_i32_0 = arith.constant 0 : i32
    %c0_i32_1 = arith.constant 0 : i32
    return %c0_i32, %c0_i32_0 : i32, i32
  }
  func.func @transform_2(%arg0: i32) -> (i32, i32) {
    %c0_i32 = arith.constant 0 : i32
    %c0_i32_0 = arith.constant 0 : i32
    %c0_i32_1 = arith.constant 0 : i32
    return %c0_i32, %c0_i32_0 : i32, i32
  }
  func.func @transform_3(%arg0: i32) -> (i32, i32) {
    %c0_i32 = arith.constant 0 : i32
    %c0_i32_0 = arith.constant 0 : i32
    %c0_i32_1 = arith.constant 0 : i32
    return %c0_i32, %c0_i32_0 : i32, i32
  }
  func.func @transform_4(%arg0: i32) -> (i32, i32) {
    %c0_i32 = arith.constant 0 : i32
    %c0_i32_0 = arith.constant 0 : i32
    %c0_i32_1 = arith.constant 0 : i32
    return %c0_i32, %c0_i32_0 : i32, i32
  }
  func.func @transform_5(%arg0: i32) -> (i32, i32) {
    %c0_i32 = arith.constant 0 : i32
    %c0_i32_0 = arith.constant 0 : i32
    %c0_i32_1 = arith.constant 0 : i32
    return %c0_i32, %c0_i32_0 : i32, i32
  }
  func.func @transform_6(%arg0: i32) -> (i32, i32) {
    %c0_i32 = arith.constant 0 : i32
    %c0_i32_0 = arith.constant 0 : i32
    %c0_i32_1 = arith.constant 0 : i32
    return %c0_i32, %c0_i32_0 : i32, i32
  }
  func.func @transform_7(%arg0: i32) -> (i32, i32) {
    %c0_i32 = arith.constant 0 : i32
    %c0_i32_0 = arith.constant 0 : i32
    return %arg0, %c0_i32 : i32, i32
  }
}

module attributes {stable_mosaic.version = 11 : i64} {
  func.func @_head_kernel(%arg0: i32, %arg1: memref<2x8x32xbf16, #tpu.memory_space<vmem>>, %arg2: memref<1x32xf32, #tpu.memory_space<vmem>>, %arg3: memref<1x32xf32, #tpu.memory_space<vmem>>, %arg4: memref<8x32xf32, #tpu.memory_space<vmem>>, %arg5: memref<1x1xf32, #tpu.memory_space<vmem>>, %arg6: memref<2x1xf32, #tpu.memory_space<vmem>>) attributes {dimension_semantics = [#tpu.dimension_semantics<arbitrary>], iteration_bounds = array<i64: 1>, scalar_prefetch = 0 : i64, scratch_operands = 0 : i64, tpu.core_type = #tpu.core_type<tc>, window_params = [{pipeline_mode = #tpu.pipeline_mode<synchronous>, transform_indices = @transform_0, window_bounds = array<i64: 2, 8, 32>}, {pipeline_mode = #tpu.pipeline_mode<synchronous>, transform_indices = @transform_1, window_bounds = array<i64: 1, 32>}, {pipeline_mode = #tpu.pipeline_mode<synchronous>, transform_indices = @transform_2, window_bounds = array<i64: 1, 32>}, {pipeline_mode = #tpu.pipeline_mode<synchronous>, transform_indices = @transform_3, window_bounds = array<i64: 8, 32>}, {pipeline_mode = #tpu.pipeline_mode<synchronous>, transform_indices = @transform_4, window_bounds = array<i64: 1, 1>}, {pipeline_mode = #tpu.pipeline_mode<synchronous>, transform_indices = @transform_5, window_bounds = array<i64: 2, 1>}]} {
    %c0 = arith.constant 0 : index
    %c0_0 = arith.constant 0 : index
    %c0_1 = arith.constant 0 : index
    %0 = vector.load %arg1[%c0, %c0_0, %c0_1] : memref<2x8x32xbf16, #tpu.memory_space<vmem>>, vector<2x8x32xbf16>
    %1 = arith.extf %0 : vector<2x8x32xbf16> to vector<2x8x32xf32>
    %cst = arith.constant dense<0.000000e+00> : vector<2x8xf32>
    %2 = vector.multi_reduction <add>, %1, %cst [2] : vector<2x8x32xf32> to vector<2x8xf32>
    %3 = vector.shape_cast %2 : vector<2x8xf32> to vector<2x8x1xf32>
    %cst_2 = arith.constant 3.200000e+01 : f32
    %4 = vector.broadcast %cst_2 : f32 to vector<2x8x1xf32>
    %5 = arith.divf %3, %4 : vector<2x8x1xf32>
    %6 = vector.broadcast %5 : vector<2x8x1xf32> to vector<2x8x32xf32>
    %7 = arith.subf %1, %6 : vector<2x8x32xf32>
    %8 = arith.mulf %7, %7 : vector<2x8x32xf32>
    %cst_3 = arith.constant dense<0.000000e+00> : vector<2x8xf32>
    %9 = vector.multi_reduction <add>, %8, %cst_3 [2] : vector<2x8x32xf32> to vector<2x8xf32>
    %10 = vector.shape_cast %9 : vector<2x8xf32> to vector<2x8x1xf32>
    %cst_4 = arith.constant 3.200000e+01 : f32
    %11 = vector.broadcast %cst_4 : f32 to vector<2x8x1xf32>
    %12 = arith.divf %10, %11 : vector<2x8x1xf32>
    %cst_5 = arith.constant 9.99999974E-6 : f32
    %13 = vector.broadcast %cst_5 : f32 to vector<2x8x1xf32>
    %14 = arith.addf %12, %13 : vector<2x8x1xf32>
    %15 = math.rsqrt %14 : vector<2x8x1xf32>
    %16 = vector.broadcast %15 : vector<2x8x1xf32> to vector<2x8x32xf32>
    %17 = arith.mulf %7, %16 : vector<2x8x32xf32>
    %c0_6 = arith.constant 0 : index
    %c0_7 = arith.constant 0 : index
    %18 = vector.load %arg2[%c0_6, %c0_7] : memref<1x32xf32, #tpu.memory_space<vmem>>, vector<1x32xf32>
    %19 = vector.shape_cast %18 : vector<1x32xf32> to vector<1x1x32xf32>
    %20 = vector.broadcast %19 : vector<1x1x32xf32> to vector<2x8x32xf32>
    %21 = arith.mulf %17, %20 : vector<2x8x32xf32>
    %c0_8 = arith.constant 0 : index
    %c0_9 = arith.constant 0 : index
    %22 = vector.load %arg3[%c0_8, %c0_9] : memref<1x32xf32, #tpu.memory_space<vmem>>, vector<1x32xf32>
    %23 = vector.shape_cast %22 : vector<1x32xf32> to vector<1x1x32xf32>
    %24 = vector.broadcast %23 : vector<1x1x32xf32> to vector<2x8x32xf32>
    %25 = arith.addf %21, %24 : vector<2x8x32xf32>
    %c0_10 = arith.constant 0 : index
    %c0_11 = arith.constant 0 : index
    %26 = vector.load %arg4[%c0_10, %c0_11] : memref<8x32xf32, #tpu.memory_space<vmem>>, vector<8x32xf32>
    %27 = vector.shape_cast %26 : vector<8x32xf32> to vector<1x8x32xf32>
    %28 = vector.broadcast %27 : vector<1x8x32xf32> to vector<2x8x32xf32>
    %29 = arith.mulf %25, %28 : vector<2x8x32xf32>
    %cst_12 = arith.constant dense<0.000000e+00> : vector<2x8xf32>
    %30 = vector.multi_reduction <add>, %29, %cst_12 [2] : vector<2x8x32xf32> to vector<2x8xf32>
    %cst_13 = arith.constant dense<0.000000e+00> : vector<2xf32>
    %31 = vector.multi_reduction <add>, %30, %cst_13 [1] : vector<2x8xf32> to vector<2xf32>
    %32 = vector.shape_cast %31 : vector<2xf32> to vector<2x1xf32>
    %c0_14 = arith.constant 0 : index
    %c0_15 = arith.constant 0 : index
    %33 = vector.load %arg5[%c0_14, %c0_15] : memref<1x1xf32, #tpu.memory_space<vmem>>, vector<1x1xf32>
    %34 = vector.broadcast %33 : vector<1x1xf32> to vector<2x1xf32>
    %35 = arith.addf %32, %34 : vector<2x1xf32>
    %c0_16 = arith.constant 0 : index
    %c0_17 = arith.constant 0 : index
    %36 = vector.load %arg6[%c0_16, %c0_17] : memref<2x1xf32, #tpu.memory_space<vmem>>, vector<2x1xf32>
    tpu.vector_store %arg6[%c0_16, %c0_17], %35 {strides = array<i32>} : memref<2x1xf32, #tpu.memory_space<vmem>>, vector<2x1xf32>,
    return
  }
  func.func @transform_0(%arg0: i32) -> (i32, i32, i32) {
    %c0_i32 = arith.constant 0 : i32
    %c0_i32_0 = arith.constant 0 : i32
    %c0_i32_1 = arith.constant 0 : i32
    %c0_i32_2 = arith.constant 0 : i32
    return %c0_i32, %c0_i32_0, %c0_i32_1 : i32, i32, i32
  }
  func.func @transform_1(%arg0: i32) -> (i32, i32) {
    %c0_i32 = arith.constant 0 : i32
    %c0_i32_0 = arith.constant 0 : i32
    %c0_i32_1 = arith.constant 0 : i32
    return %c0_i32, %c0_i32_0 : i32, i32
  }
  func.func @transform_2(%arg0: i32) -> (i32, i32) {
    %c0_i32 = arith.constant 0 : i32
    %c0_i32_0 = arith.constant 0 : i32
    %c0_i32_1 = arith.constant 0 : i32
    return %c0_i32, %c0_i32_0 : i32, i32
  }
  func.func @transform_3(%arg0: i32) -> (i32, i32) {
    %c0_i32 = arith.constant 0 : i32
    %c0_i32_0 = arith.constant 0 : i32
    %c0_i32_1 = arith.constant 0 : i32
    return %c0_i32, %c0_i32_0 : i32, i32
  }
  func.func @transform_4(%arg0: i32) -> (i32, i32) {
    %c0_i32 = arith.constant 0 : i32
    %c0_i32_0 = arith.constant 0 : i32
    %c0_i32_1 = arith.constant 0 : i32
    return %c0_i32, %c0_i32_0 : i32, i32
  }
  func.func @transform_5(%arg0: i32) -> (i32, i32) {
    %c0_i32 = arith.constant 0 : i32
    %c0_i32_0 = arith.constant 0 : i32
    %c0_i32_1 = arith.constant 0 : i32
    return %c0_i32, %c0_i32_0 : i32, i32
  }
}

</mosaic_0001>

<bundles_post_ra>
// kernel: transformer_forward.6
= control target key start
LH: loop header
LB: loop body
LE: loop exit
PB: predicated region body
PF: predicated region fallthrough
CT: control target
= control target key end

     0   :  { %8 = vsyncpa [#allocation3], 0  ;;  %s115_s15 = smov [#allocation2]   ;;  %s151_s0 = inlined_call_operand.vmem [shape: bf16[16,16], index: 0, kind: input, shape index: {}]   ;;  %s152_s1 = inlined_call_operand.vmem [shape: bf16[16,32], index: 1, kind: input, shape index: {}]   ;;  %s153_s2 = inlined_call_operand.hbm [shape: f32[1,32], index: 2, kind: input, shape index: {}]   ;;  %s154_s3 = inlined_call_operand.vmem [shape: bf16[16,32], index: 3, kind: output, shape index: {}]  }
   0x1   :  { %s18_s14 = sshll.u32 %s153_s2, 4  ;;  %s20_s16 = sshll.u32 %s115_s15, 4  ;;  %s19_s14 = int_to_ptr.hbm [resolvable:$true] %s18_s14  ;;  %s21_s16 = int_to_ptr.vmem [resolvable:$true] %s20_s16 }
   0x2   :  { %23 = dma.hbm_to_vmem [thread:$0]  %s19_s14, 16, %s21_s16, [#allocation3]  }
   0x3   :  { %113 = dma.done.wait [#allocation3], 16  }
   0x4   :  { %114 = vsyncadd [#allocation3], 4294967280  ;;  %v86_v0 = vld [vmem:[%s152_s1] sm:$0xff]  ;;  %vm48_vm0 = vcmask 130048   ;;  %vm68_vm1 = vcmask 257024  }
   0x5   :  { %v85_v1 = vld [vmem:[%s151_s0] sm:$0xff]  ;;  %59 = vmatpush.bf16.msra.mxu0 %v86_v0 }
   0x6   :  { %v88_v2 = vld [vmem:[#allocation2] ss:$0 sm:$0xff] }
   0x8   :  { %84 = vmatmul.msk.bf16.vlgmr.msra.gmra.mxu0 %vm48_vm0, %v85_v1 }
  0x85   :  { %v61_v3 = vpop.f32.mrf.mxu0 }
  0x86   :  { %v62_v4 = vadd.f32 %v88_v2, %v61_v3 }
  0x88   :  { %v66_v5 = vpack.c.bf16 %v62_v4, %v62_v4 }
  0x8a   :  { %69 = vst.msk [vmem:[%s154_s3] sm:$0xf] %vm68_vm1, %v66_v5 }
  0x8d   :  { %v63_v6 = vpop.f32.mrf.mxu0 }
  0x8e   :  { %v64_v7 = vadd.f32 %v88_v2, %v63_v6 }
  0x90   :  { %v67_v8 = vpack.c.bf16 %v64_v7, %v64_v7 }
  0x92   :  { %70 = vst.msk [vmem:[%s154_s3 + $0x4] sm:$0xf] %vm68_vm1, %v67_v8 }
  0x93   :  { %75 = vsyncpa [#allocation3], 1 }

// kernel: transformer_forward.7
= control target key start
LH: loop header
LB: loop body
LE: loop exit
PB: predicated region body
PF: predicated region fallthrough
CT: control target
= control target key end

     0   :  { %12 = vsyncpa [#allocation3], 0  ;;  %s1263_s0 = inlined_call_operand.vmem [shape: bf16[2,8,32], index: 0, kind: input, shape index: {}]   ;;  %s1264_s1 = inlined_call_operand.vmem [shape: bf16[32,96], index: 1, kind: input, shape index: {}]   ;;  %s1265_s2 = inlined_call_operand.hbm [shape: f32[1,96], index: 2, kind: input, shape index: {}]   ;;  %s1266_s3 = inlined_call_operand.vmem [shape: bf16[32,32], index: 3, kind: input, shape index: {}]   ;;  %s1267_s4 = inlined_call_operand.hbm [shape: f32[1,32], index: 4, kind: input, shape index: {}]   ;;  %s1268_s5 = inlined_call_operand.hbm [shape: f32[1,32], index: 5, kind: input, shape index: {}]   ;;  %s1269_s6 = inlined_call_operand.hbm [shape: f32[1,32], index: 6, kind: input, shape index: {}]   ;;  %s1270_s7 = inlined_call_operand.vmem [shape: bf16[2,8,32], index: 7, kind: output, shape index: {}]  }
   0x1   :  { %13 = vsyncpa [#allocation5], 0 }
   0x2   :  { %14 = vsyncpa [#allocation8], 0  ;;  %s1130_s24 = smov 0  }
   0x3 LB: > { %s233_s27 = sshll.u32 %s1267_s4, 4  ;;  %s1139_s28 = sadd.s32 4294967295, %s1069_s24   ;;  %s1069_s24 = sphi %s1130_s24, %s20_s24   ;;  %s234_s27 = int_to_ptr.hbm [resolvable:$true] %s233_s27 }
   0x4   : > { %p798_p0 = scmp.ge.s32.totalorder %s1069_s24, 1  ;;  %p203_p1 = scmp.lt.s32.totalorder %s1069_s24, 3 }
   0x5   : > { %p872_p2 = scmp.eq.s32.totalorder %s1139_s28, 0  ;;  %s1071_s30 = smov [#allocation4]  }
   0x6   : > { %p1144_p3 = pnand %p798_p0, %p203_p1  ;;  %s235_s8 = sshll.u32 %s1071_s30, 4  ;;  %s236_s8 = int_to_ptr.vmem [resolvable:$true] %s235_s8 }
   0x7   : > { %s218_s11 = sshll.u32 %s1265_s2, 4  ;;  %s245_s14 = sshll.u32 %s1268_s5, 4  ;;  %s219_s11 = int_to_ptr.hbm [resolvable:$true] %s218_s11  ;;  %s246_s14 = int_to_ptr.hbm [resolvable:$true] %s245_s14 }
   0x8   : > { %p859_p4 = pneg %p1144_p3  ;;  %s1072_s16 = smov [#allocation2]  }
   0x9   : > { %s220_s17 = sshll.u32 %s1072_s16, 4  ;;  %s1073_s18 = smov [#allocation6]   ;;  %s221_s17 = int_to_ptr.vmem [resolvable:$true] %s220_s17 }
   0xa   : > { %p1158_p5 = pnand %p872_p2, %p859_p4  ;;  %s247_s19 = sshll.u32 %s1073_s18, 4  ;;  %s248_s19 = int_to_ptr.vmem [resolvable:$true] %s247_s19 }
   0xb   : > { %s257_s22 = sshll.u32 %s1269_s6, 4  ;;  %s1074_s23 = smov [#allocation7]   ;;  %s258_s22 = int_to_ptr.hbm [resolvable:$true] %s257_s22 }
   0xc   : > { %865 = dma.hbm_to_vmem [thread:$0]  (!%p1158_p5), %s234_s27, 16, %s236_s8, [#allocation5]  }
   0xd   : > { %862 = dma.hbm_to_vmem [thread:$0]  (!%p1158_p5), %s219_s11, 16, %s221_s17, [#allocation3]  }
   0xe   : > { %868 = dma.hbm_to_vmem [thread:$0]  (!%p1158_p5), %s246_s14, 16, %s248_s19, [#allocation5]  }
   0xf   : > { %s259_s25 = sshll.u32 %s1074_s23, 4  ;;  %279 = sbr.rel (%p1144_p3) target bundleno = 1372 (0x55c), region = 48  ;;  %s260_s25 = int_to_ptr.vmem [resolvable:$true] %s259_s25 }
  0x10   : > { %871 = dma.hbm_to_vmem [thread:$0]  (!%p1158_p5), %s258_s22, 16, %s260_s25, [#allocation8]  }
  0x14   : > { %1056 = dma.done.wait (%p872_p2), [#allocation3], 16  }
  0x15   : > { %1058 = vsyncadd (%p872_p2), [#allocation3], 4294967280 }
  0x16   : > { %1060 = dma.done.wait (%p872_p2), [#allocation5], 32  }
  0x17   : > { %1062 = vsyncadd (%p872_p2), [#allocation5], 4294967264 }
  0x18   : > { %1064 = dma.done.wait (%p872_p2), [#allocation8], 16  }
  0x19   : > { %1066 = vsyncadd (%p872_p2), [#allocation8], 4294967280  ;;  %p325_p6 = scmp.lt.s32.totalorder %s1139_s28, 1  ;;  %v840_v0 = vld [vmem:[%s1264_s1 + $0x8] sm:$0xff]  ;;  %v839_v1 = vld [vmem:[%s1264_s1] sm:$0xff]  ;;  %vm355_vm0 = vcmask 261120  }
  0x1a   : > { %365 = vmatpush.bf16.msra.mxu0 %v840_v0  ;;  %v907_v3 = vld [vmem:[#allocation2] ss:$0 sm:$0xff]  ;;  %s1075_s12 = smov 104   ;;  %s1076_s13 = smov 120   ;;  %vm378_vm1 = vcmask 64512   ;;  %vm416_vm2 = vcmask 1043456  }
  0x1b   : > { %s1274_s28 = smov (!%p325_p6, %s1139_s28), 1  ;;  %s1077_s14 = smov 96   ;;  %vm617_vm3 = vcmask 130048   ;;  %vm619_vm4 = vcmask 195584   ;;  %vm700_vm9 = vcmask 257024  }
  0x1c   : > { %s809_s29 = sshll.u32 %s1274_s28, 2  ;;  %s1078_s15 = smov 80  }
  0x1d   : > { %s328_s11 = scalar_lea.vmem %s1263_s0, %s809_s29  ;;  %s1079_s16 = smov 72  }
  0x1e   : > { %366 = vmatpush.bf16.msra.mxu0 %v839_v1  ;;  %v1203_v2 = vld [vmem:[%s328_s11] sm:$0xf]  ;;  %s1080_s17 = smov 88   ;;  %s1081_s18 = smov 112  }
  0x1f   : > { %s1082_s19 = smov 64   ;;  %s1083_s20 = smov 40  }
  0x20   : > { %s1084_s21 = smov 56   ;;  %s1085_s22 = smov 48  }
  0x21   : > { %819 = vmatmul.msk.bf16.vlgmr.msra.gmra.mxu0 %vm355_vm0, %v1203_v2  ;;  %s1086_s23 = smov 8   ;;  %s1087_s25 = smov 16  }
  0x22   : > { %s1088_s26 = smov 24  }
  0x9e   : > { %v368_v4 = vpop.f32.mrf.mxu0 }
  0x9f   : > { %v369_v5 = vadd.f32 %v907_v3, %v368_v4 }
  0xa1   : > { %v372_v6 = vpack.c.bf16 %v369_v5, %v369_v5 }
  0xa3   : > { %v374_v7 = vunpack.c.l.b16 %v372_v6 }
  0xa5   : > { %v1207_v8 = vpack.c.b16 %v374_v7, %v374_v7 }
  0xa6   : > { %v370_v9 = vpop.f32.mrf.mxu0 }
  0xa7   : > { %547 = vrot.lane.b32.xlu2 %v1207_v8, %s1075_s12  ;;  %433 = vrot.lane.b32.xlu1 %v1207_v8, %s1076_s13  ;;  %s332_s12 = scalar_lea.vmem %s1270_s7, %s809_s29 }
  0xa8   : > { %376 = vrot.lane.b32.xlu0 %v1207_v8, %s1077_s14 }
  0xaf   : > { %492 = vrot.lane.b32.xlu2 %v1207_v8, %s1078_s15  ;;  %549 = vrot.lane.b32.xlu1 %v1207_v8, %s1079_s16 }
  0xb0   : > { %435 = vrot.lane.b32.xlu0 %v1207_v8, %s1080_s17 }
  0xb8   : > { %490 = vrot.lane.b32.xlu0 %v1207_v8, %s1081_s18 }
 0x101   : > { %v548_v10 = vpop.permute.xlu2 %547 }
 0x109   : > { %v493_v11 = vpop.permute.xlu2 %492 }
 0x10a   : > { %v498_v12 = vsel %vm378_vm1, %v493_v11, 0 }
 0x10b   : > { %507 = vmatpush.bf16.xpose.msrb.mxu0 %v498_v12 }
 0x119   : > { %v434_v13 = vpop.permute.xlu1 %433 }
 0x11a   : > { %v377_v14 = vpop.permute.xlu0 %376 }
 0x11b   : > { %v383_v15 = vsel %vm378_vm1, %v377_v14, 0 }
 0x11c   : > { %392 = vmatpush.bf16.xpose.msra.mxu1 %v383_v15 }
 0x121   : > { %v550_v16 = vpop.permute.xlu1 %549 }
 0x122   : > { %v436_v17 = vpop.permute.xlu0 %435  ;;  %v555_v18 = vsel %vm378_vm1, %v550_v16, 0 }
 0x123   : > { %820 = vmatmul.msk.bf16.vlgmr.msra.gmra.mxu1 %vm378_vm1, %v372_v6  ;;  %v441_v19 = vsel %vm378_vm1, %v436_v17, 0 }
 0x124   : > { %450 = vmatpush.bf16.xpose.msra.mxu3 %v441_v19 }
 0x12a   : > { %v491_v20 = vpop.permute.xlu0 %490 }
 0x12b   : > { %822 = vmatmul.msk.bf16.vlgmr.msra.gmra.mxu3 %vm378_vm1, %v434_v13  ;;  %824 = vmatmul.msk.bf16.vlgmr.msrb.gmra.mxu0 %vm378_vm1, %v491_v20 }
 0x12c   : > { %564 = vmatpush.bf16.xpose.msrb.mxu3 %v555_v18 }
 0x13b   : > { %826 = vmatmul.msk.bf16.vlgmr.msrb.gmra.mxu3 %vm378_vm1, %v548_v10 }
 0x1a0   : > { %v394_v21 = vpop.f32.mrf.mxu1 }
 0x1a1   : > { %v398_v22 = vmul.f32 0.35355338, %v394_v21 }
 0x1a3   : > { %v399_v23 = vsel %vm378_vm1, %v398_v22, -inf }
 0x1a4   : > { %400 = vmax.xlane.f32.xlu1 %v399_v23 }
 0x1a8   : > { %v396_v24 = vpop.f32.mrf.mxu1  ;;  %v509_v25 = vpop.f32.mrf.mxu0 }
 0x1a9   : > { %v513_v30 = vmul.f32 0.35355338, %v509_v25 }
 0x1ab   : > { %v514_v32 = vsel %vm378_vm1, %v513_v30, -inf }
 0x1ae   : > { %v452_v26 = vpop.f32.mrf.mxu3 }
 0x1af   : > { %v456_v27 = vmul.f32 0.35355338, %v452_v26  ;;  %v842_v26 = vld [vmem:[%s1266_s3 + $0x8] sm:$0xff] }
 0x1b0   : > { %v511_v28 = vpop.f32.mrf.mxu0  ;;  %651 = vmatpush.bf16.msra.mxu0 %v842_v26 }
 0x1b1   : > { %v457_v29 = vsel %vm378_vm1, %v456_v27, -inf }
 0x1b2   : > { %458 = vmax.xlane.f32.xlu2 %v457_v29 }
 0x1b6   : > { %v454_v31 = vpop.f32.mrf.mxu3 }
 0x1ba   : > { %515 = vmax.xlane.f32.xlu2 %v514_v32 }
 0x1be   : > { %v566_v33 = vpop.f32.mrf.mxu3 }
 0x1bf   : > { %v570_v34 = vmul.f32 0.35355338, %v566_v33 }
 0x1c1   : > { %v571_v35 = vsel %vm378_vm1, %v570_v34, -inf }
 0x1c2   : > { %572 = vmax.xlane.f32.xlu0 %v571_v35  ;;  %v908_v35 = vld [vmem:[#allocation4] ss:$0 sm:$0xff] }
 0x1c6   : > { %v568_v36 = vpop.f32.mrf.mxu3 }
 0x1c7   : > { %v658_v36 = vunpack.c.l.bf16 %v1203_v2 }
 0x1d2   : > { %411 = vrot.lane.b32.xlu2 %v1207_v8, %s1082_s19 }
 0x1da   : > { %583 = vrot.lane.b32.xlu2 %v1207_v8, %s1083_s20 }
 0x217   : > { %v401_v37 = vpop.xlane.xlu1 %400 }
 0x218   : > { %v402_v38 = vsub.f32 %v398_v22, %v401_v37 }
 0x21a   : > { %v403_v39 = vmul.f32 1.442695, %v402_v38 }
 0x21c   : > { %911 = vpow2.f32 %v403_v39 }
 0x222   : > { %v912_v40 = vpop.eup %911 }
 0x223   : > { %v405_v41 = vsel %vm378_vm1, %v912_v40, 0.0 }
 0x224   : > { %406 = vadd.xlane.f32.xlu1 %v405_v41 }
 0x225   : > { %v459_v42 = vpop.xlane.xlu2 %458 }
 0x226   : > { %v460_v45 = vsub.f32 %v456_v27, %v459_v42  ;;  %v841_v27 = vld [vmem:[%s1266_s3] sm:$0xff]  ;;  %v1089_v42 = vmov 32.0  }
 0x227   : > { %652 = vmatpush.bf16.msra.mxu0 %v841_v27 }
 0x228   : > { %v461_v47 = vmul.f32 1.442695, %v460_v45 }
 0x22d   : > { %v516_v43 = vpop.xlane.xlu2 %515 }
 0x22e   : > { %v517_v44 = vsub.f32 %v513_v30, %v516_v43 }
 0x230   : > { %v518_v46 = vmul.f32 1.442695, %v517_v44 }
 0x232   : > { %913 = vpow2.f32 %v518_v46 }
 0x233   : > { %915 = vpow2.f32 %v461_v47 }
 0x235   : > { %v412_v48 = vpop.permute.xlu2 %411  ;;  %v573_v49 = vpop.xlane.xlu0 %572 }
 0x236   : > { %v418_v50 = vsel %vm416_vm2, %v412_v48, 0  ;;  %v574_v52 = vsub.f32 %v570_v34, %v573_v49 }
 0x237   : > { %427 = vmatpush.bf16.msra.mxu2 %v418_v50 }
 0x238   : > { %v914_v51 = vpop.eup %913  ;;  %v575_v54 = vmul.f32 1.442695, %v574_v52 }
 0x239   : > { %v520_v53 = vsel %vm378_vm1, %v914_v51, 0.0  ;;  %v916_v55 = vpop.eup %915 }
 0x23a   : > { %521 = vadd.xlane.f32.xlu0 %v520_v53  ;;  %917 = vpow2.f32 %v575_v54  ;;  %v463_v56 = vsel %vm378_vm1, %v916_v55, 0.0 }
 0x23d   : > { %469 = vrot.lane.b32.xlu1 %v1207_v8, %s1084_s21  ;;  %v584_v0 = vpop.permute.xlu2 %583 }
 0x23e   : > { %v589_v4 = vsel %vm416_vm2, %v584_v0, 0  ;;  %v910_v0 = vld [vmem:[#allocation7] ss:$0 sm:$0xff] }
 0x240   : > { %v918_v57 = vpop.eup %917 }
 0x241   : > { %v577_v58 = vsel %vm378_vm1, %v918_v57, 0.0 }
 0x242   : > { %464 = vadd.xlane.f32.xlu0 %v463_v56 }
 0x24a   : > { %578 = vadd.xlane.f32.xlu0 %v577_v58 }
 0x25e   : > { %526 = vrot.lane.b32.xlu0 %v1207_v8, %s1085_s22 }
 0x297   : > { %v407_v59 = vpop.xlane.xlu1 %406 }
 0x298   : > { %919 = vrcp.f32 %v407_v59 }
 0x29e   : > { %v920_v60 = vpop.eup %919 }
 0x29f   : > { %v409_v61 = vmul.f32 %v920_v60, %v912_v40 }
 0x2a1   : > { %v410_v62 = vpack.c.bf16 %v409_v61, %v409_v61 }
 0x2a3   : > { %821 = vmatmul.msk.bf16.vlgmr.msra.gmra.mxu2 %vm378_vm1, %v410_v62  ;;  %v909_v62 = vld [vmem:[#allocation6] ss:$0 sm:$0xff] }
 0x2ad   : > { %v522_v63 = vpop.xlane.xlu0 %521 }
 0x2af   : > { %v470_v1 = vpop.permute.xlu1 %469 }
 0x2b0   : > { %v475_v3 = vsel %vm416_vm2, %v470_v1, 0 }
 0x2b1   : > { %484 = vmatpush.bf16.msrb.mxu2 %v475_v3 }
 0x2b5   : > { %598 = vmatpush.bf16.msra.mxu2 %v589_v4  ;;  %v465_v5 = vpop.xlane.xlu0 %464 }
 0x2b6   : > { %921 = vrcp.f32 %v465_v5 }
 0x2bc   : > { %v922_v6 = vpop.eup %921 }
 0x2bd   : > { %v467_v7 = vmul.f32 %v922_v6, %v916_v55  ;;  %v579_v8 = vpop.xlane.xlu0 %578 }
 0x2be   : > { %923 = vrcp.f32 %v579_v8 }
 0x2bf   : > { %v468_v9 = vpack.c.bf16 %v467_v7, %v467_v7  ;;  %925 = vrcp.f32 %v522_v63 }
 0x2c0   : > { %927 = vrcp.f32 %v1089_v42 }
 0x2c1   : > { %823 = vmatmul.msk.bf16.vlgmr.msrb.gmra.mxu2 %vm378_vm1, %v468_v9 }
 0x2c4   : > { %v924_v10 = vpop.eup %923 }
 0x2c5   : > { %v581_v11 = vmul.f32 %v924_v10, %v918_v57  ;;  %v926_v12 = vpop.eup %925 }
 0x2c6   : > { %v524_v13 = vmul.f32 %v926_v12, %v914_v51  ;;  %v928_v43 = vpop.eup %927 }
 0x2c7   : > { %v582_v14 = vpack.c.bf16 %v581_v11, %v581_v11  ;;  %v664_v44 = vmul.f32 32.0, %v928_v43  ;;  %vm668_vm5 = vweird.f32 %v928_v43 }
 0x2c8   : > { %v525_v17 = vpack.c.bf16 %v524_v13, %v524_v13 }
 0x2c9   : > { %v665_v45 = vsub.f32 1.0, %v664_v44 }
 0x2cb   : > { %v666_v46 = vmul.f32 %v928_v43, %v665_v45 }
 0x2cd   : > { %v667_v47 = vadd.f32 %v928_v43, %v666_v46 }
 0x2cf   : > { %v669_v48 = vsel %vm668_vm5, %v928_v43, %v667_v47 }
 0x2d0   : > { %v527_v15 = vpop.permute.xlu0 %526 }
 0x2d1   : > { %827 = vmatmul.msk.bf16.vlgmr.msra.gmra.mxu2 %vm378_vm1, %v582_v14  ;;  %v532_v16 = vsel %vm416_vm2, %v527_v15, 0 }
 0x2d2   : > { %541 = vmatpush.bf16.msrb.mxu1 %v532_v16 }
 0x2d5   : > { %825 = vmatmul.msk.bf16.vlgmr.msrb.gmra.mxu1 %vm378_vm1, %v525_v17 }
 0x326   : > { %v429_v18 = vpop.f32.mrf.mxu2 }
 0x32e   : > { %v431_v19 = vpop.f32.mrf.mxu2 }
 0x344   : > { %v486_v20 = vpop.f32.mrf.mxu2 }
 0x345   : > { %605 = vrot.lane.b32.xlu1 %v486_v20, %s1086_s23 }
 0x34c   : > { %v488_v21 = vpop.f32.mrf.mxu2 }
 0x352   : > { %v543_v22 = vpop.f32.mrf.mxu1 }
 0x353   : > { %609 = vrot.lane.b32.xlu2 %v543_v22, %s1087_s25 }
 0x354   : > { %v600_v23 = vpop.f32.mrf.mxu2 }
 0x355   : > { %613 = vrot.lane.b32.xlu1 %v600_v23, %s1088_s26 }
 0x35a   : > { %v545_v24 = vpop.f32.mrf.mxu1 }
 0x35c   : > { %v602_v25 = vpop.f32.mrf.mxu2 }
 0x3ad   : > { %v610_v30 = vpop.permute.xlu2 %609 }
 0x3b7   : > { %v606_v28 = vpop.permute.xlu1 %605 }
 0x3b8   : > { %v616_v29 = vsel %vm378_vm1, %v429_v18, %v606_v28 }
 0x3b9   : > { %v618_v32 = vsel %vm617_vm3, %v616_v29, %v610_v30 }
 0x3c7   : > { %v614_v31 = vpop.permute.xlu1 %613 }
 0x3c8   : > { %v620_v33 = vsel %vm619_vm4, %v618_v32, %v614_v31 }
 0x3c9   : > { %v621_v34 = vpack.c.bf16 %v620_v33, %v620_v33 }
 0x3cb   : > { %836 = vmatmul.msk.bf16.vlgmr.msra.gmra.mxu0 %vm355_vm0, %v621_v34 }
 0x448   : > { %v654_v37 = vpop.f32.mrf.mxu0 }
 0x449   : > { %v655_v38 = vadd.f32 %v908_v35, %v654_v37 }
 0x44b   : > { %v659_v39 = vadd.f32 %v658_v36, %v655_v38 }
 0x44d   : > { %v660_v40 = vsel %vm355_vm0, %v659_v39, 0.0 }
 0x44e   : > { %661 = vadd.xlane.f32.xlu2 %v660_v40 }
 0x450   : > { %v656_v41 = vpop.f32.mrf.mxu0 }
 0x4c1   : > { %v662_v49 = vpop.xlane.xlu2 %661 }
 0x4c2   : > { %v670_v50 = vmul.f32 %v669_v48, %v662_v49 }
 0x4c4   : > { %v671_v51 = vsub.f32 %v659_v39, %v670_v50 }
 0x4c6   : > { %v672_v2 = vmul.f32 %v671_v51, %v671_v51 }
 0x4c8   : > { %v673_v52 = vsel %vm355_vm0, %v672_v2, 0.0 }
 0x4c9   : > { %674 = vadd.xlane.f32.xlu1 %v673_v52 }
 0x53c   : > { %v675_v53 = vpop.xlane.xlu1 %674 }
 0x53d   : > { %v676_v54 = vmul.f32 %v675_v53, %v669_v48 }
 0x53f   : > { %v677_v55 = vadd.f32 1e-05, %v676_v54 }
 0x541   : > { %929 = vrsqrt.f32 %v677_v55  ;;  %vm684_vm7 = vweird.f32 %v677_v55 }
 0x547   : > { %v930_v56 = vpop.eup %929 }
 0x548   : > { %v679_v57 = vmul.f32 %v930_v56, %v677_v55  ;;  %vm685_vm6 = vweird.f32 %v930_v56 }
 0x549   : > { %vm686_vm8 = vmor %vm684_vm7, %vm685_vm6 }
 0x54a   : > { %v680_v58 = vmul.f32 %v930_v56, %v679_v57 }
 0x54c   : > { %v681_v59 = vmul.f32 0.5, %v680_v58 }
 0x54e   : > { %v682_v60 = vsub.f32 1.5, %v681_v59 }
 0x550   : > { %v683_v61 = vmul.f32 %v930_v56, %v682_v60 }
 0x552   : > { %v687_v63 = vsel %vm686_vm8, %v930_v56, %v683_v61 }
 0x553   : > { %v688_v1 = vmul.f32 %v687_v63, %v671_v51 }
 0x555   : > { %v693_v3 = vmul.f32 %v909_v62, %v688_v1 }
 0x557   : > { %v698_v4 = vadd.f32 %v910_v0, %v693_v3 }
 0x559   : > { %v699_v5 = vpack.c.bf16 %v698_v4, %v698_v4 }
 0x55b   : > { %701 = vst.msk [vmem:[%s332_s12] sm:$0xf] %vm700_vm9, %v699_v5 }
 0x55c PF: > { %s20_s24 = sadd.s32 1, %s1069_s24  }
 0x55d   : > { %p17_p7 = scmp.ge.s32.totalorder %s20_s24, 4  }
 0x55f   :  { %19 = sbr.rel (!%p17_p7) target bundleno = 3 (0x3), region = 95 }
 0x564   :  { %721 = vsyncpa [#allocation3], 1 }
 0x565   :  { %723 = vsyncpa [#allocation3 + $0x1], 1 }
 0x566   :  { %724 = vsyncpa [#allocation5], 1 }
 0x567   :  { %725 = vsyncpa [#allocation8], 1 }

// kernel: transformer_forward.8
= control target key start
LH: loop header
LB: loop body
LE: loop exit
PB: predicated region body
PF: predicated region fallthrough
CT: control target
= control target key end

     0   :  { %12 = vsyncpa [#allocation3], 0  ;;  %s509_s0 = inlined_call_operand.vmem [shape: bf16[16,32], index: 0, kind: input, shape index: {}]   ;;  %s510_s1 = inlined_call_operand.vmem [shape: bf16[32,64], index: 1, kind: input, shape index: {}]   ;;  %s511_s2 = inlined_call_operand.hbm [shape: f32[1,64], index: 2, kind: input, shape index: {}]   ;;  %s512_s3 = inlined_call_operand.vmem [shape: bf16[64,32], index: 3, kind: input, shape index: {}]   ;;  %s513_s4 = inlined_call_operand.hbm [shape: f32[1,32], index: 4, kind: input, shape index: {}]   ;;  %s514_s5 = inlined_call_operand.hbm [shape: f32[1,32], index: 5, kind: input, shape index: {}]   ;;  %s515_s6 = inlined_call_operand.hbm [shape: f32[1,32], index: 6, kind: input, shape index: {}]   ;;  %s516_s7 = inlined_call_operand.vmem [shape: bf16[16,32], index: 7, kind: output, shape index: {}]  }
   0x1   :  { %13 = vsyncpa [#allocation5], 0  ;;  %s37_s26 = sshll.u32 %s513_s4, 4  ;;  %s38_s26 = int_to_ptr.hbm [resolvable:$true] %s37_s26 }
   0x2   :  { %14 = vsyncpa [#allocation8], 0  ;;  %s417_s27 = smov [#allocation4]   ;;  %s24_s8 = sshll.u32 %s511_s2, 4  ;;  %s25_s8 = int_to_ptr.hbm [resolvable:$true] %s24_s8 }
   0x3   :  { %s39_s28 = sshll.u32 %s417_s27, 4  ;;  %s418_s9 = smov [#allocation2]   ;;  %s40_s28 = int_to_ptr.vmem [resolvable:$true] %s39_s28 }
   0x4   :  { %42 = dma.hbm_to_vmem [thread:$0]  %s38_s26, 16, %s40_s28, [#allocation5]  }
   0x5   :  { %s26_s10 = sshll.u32 %s418_s9, 4  ;;  %s48_s13 = sshll.u32 %s514_s5, 4  ;;  %s27_s10 = int_to_ptr.vmem [resolvable:$true] %s26_s10  ;;  %s49_s13 = int_to_ptr.hbm [resolvable:$true] %s48_s13 }
   0x6   :  { %29 = dma.hbm_to_vmem [thread:$0]  %s25_s8, 16, %s27_s10, [#allocation3]  }
   0x7   :  { %s59_s15 = sshll.u32 %s515_s6, 4  ;;  %s419_s16 = smov [#allocation6]   ;;  %s60_s15 = int_to_ptr.hbm [resolvable:$true] %s59_s15 }
   0x8   :  { %s50_s17 = sshll.u32 %s419_s16, 4  ;;  %s420_s2 = smov [#allocation7]   ;;  %s51_s17 = int_to_ptr.vmem [resolvable:$true] %s50_s17 }
   0x9   :  { %53 = dma.hbm_to_vmem [thread:$0]  %s49_s13, 16, %s51_s17, [#allocation5]  }
   0xa   :  { %s61_s18 = sshll.u32 %s420_s2, 4  ;;  %s62_s18 = int_to_ptr.vmem [resolvable:$true] %s61_s18 }
   0xb   :  { %64 = dma.hbm_to_vmem [thread:$0]  %s60_s15, 16, %s62_s18, [#allocation8]  }
   0xc   :  { %411 = dma.done.wait [#allocation3], 16  }
   0xd   :  { %412 = vsyncadd [#allocation3], 4294967280 }
   0xe   :  { %413 = dma.done.wait [#allocation5], 32  }
   0xf   :  { %414 = vsyncadd [#allocation5], 4294967264 }
  0x10   :  { %415 = dma.done.wait [#allocation8], 16  }
  0x11   :  { %416 = vsyncadd [#allocation8], 4294967280  ;;  %v295_v0 = vld [vmem:[%s510_s1 + $0x8] sm:$0xff]  ;;  %v294_v1 = vld [vmem:[%s510_s1] sm:$0xff]  ;;  %vm109_vm0 = vcmask 261120   ;;  %vm166_vm1 = vcmask 523264  }
  0x12   :  { %119 = vmatpush.bf16.msra.mxu0 %v295_v0  ;;  %v293_v2 = vld [vmem:[%s509_s0] sm:$0xff]  ;;  %v299_v3 = vld [vmem:[%s512_s3 + $0x18] sm:$0xff]  ;;  %v298_v4 = vld [vmem:[%s512_s3 + $0x10] sm:$0xff]  ;;  %v421_v27 = vmov 32.0   ;;  %vm253_vm7 = vcmask 257024  }
  0x13   :  { %174 = vmatpush.bf16.msra.mxu1 %v299_v3  ;;  %v297_v5 = vld [vmem:[%s512_s3 + $0x8] sm:$0xff]  ;;  %v296_v6 = vld [vmem:[%s512_s3] sm:$0xff]  ;;  %309 = vrcp.f32 %v421_v27 }
  0x14   :  { %v305_v8 = vld [vmem:[#allocation2] ss:$0 sm:$0xff]  ;;  %v306_v16 = vld [vmem:[#allocation4] ss:$0 sm:$0xff]  ;;  %v307_v58 = vld [vmem:[#allocation6] ss:$0 sm:$0xff] }
  0x15   :  { %v82_v15 = vld [vmem:[%s509_s0] sm:$0xff]  }
  0x16   :  { %120 = vmatpush.bf16.msra.mxu0 %v294_v1  ;;  %v184_v17 = vunpack.c.l.bf16 %v82_v15  ;;  %v185_v22 = vunpack.c.h.bf16 %v82_v15  ;;  %v308_v61 = vld [vmem:[#allocation7] ss:$0 sm:$0xff] }
  0x17   :  { %175 = vmatpush.bf16.msra.mxu1 %v298_v4 }
  0x19   :  { %275 = vmatmul.msk.bf16.vlgmr.msra.gmra.mxu0 %vm109_vm0, %v293_v2  ;;  %v310_v28 = vpop.eup %309 }
  0x1a   :  { %v195_v29 = vmul.f32 32.0, %v310_v28  ;;  %vm199_vm2 = vweird.f32 %v310_v28 }
  0x1b   :  { %176 = vmatpush.bf16.msra.mxu1 %v297_v5 }
  0x1c   :  { %v196_v30 = vsub.f32 1.0, %v195_v29 }
  0x1e   :  { %v197_v31 = vmul.f32 %v310_v28, %v196_v30 }
  0x1f   :  { %177 = vmatpush.bf16.msra.mxu1 %v296_v6 }
  0x20   :  { %v198_v32 = vadd.f32 %v310_v28, %v197_v31 }
  0x22   :  { %v200_v33 = vsel %vm199_vm2, %v310_v28, %v198_v32 }
  0x96   :  { %v122_v7 = vpop.f32.mrf.mxu0 }
  0x97   :  { %v123_v9 = vadd.f32 %v305_v8, %v122_v7 }
  0x99   :  { %v127_v12 = vmax.f32 %v123_v9, 0.0 }
  0x9e   :  { %v124_v10 = vpop.f32.mrf.mxu0 }
  0x9f   :  { %v125_v11 = vadd.f32 %v305_v8, %v124_v10 }
  0xa1   :  { %v128_v13 = vmax.f32 %v125_v11, 0.0 }
  0xa3   :  { %v129_v14 = vpack.c.bf16 %v128_v13, %v127_v12 }
  0xa5   :  { %292 = vmatmul.msk.bf16.vlgmr.msra.gmra.mxu1 %vm166_vm1, %v129_v14 }
 0x122   :  { %v179_v18 = vpop.f32.mrf.mxu1 }
 0x123   :  { %v180_v19 = vadd.f32 %v306_v16, %v179_v18 }
 0x125   :  { %v186_v20 = vadd.f32 %v184_v17, %v180_v19 }
 0x127   :  { %v188_v21 = vsel %vm109_vm0, %v186_v20, 0.0 }
 0x128   :  { %189 = vadd.xlane.f32.xlu0 %v188_v21 }
 0x12a   :  { %v181_v23 = vpop.f32.mrf.mxu1 }
 0x12b   :  { %v182_v24 = vadd.f32 %v306_v16, %v181_v23 }
 0x12d   :  { %v187_v25 = vadd.f32 %v185_v22, %v182_v24 }
 0x12f   :  { %v191_v26 = vsel %vm109_vm0, %v187_v25, 0.0 }
 0x130   :  { %192 = vadd.xlane.f32.xlu0 %v191_v26 }
 0x19b   :  { %v190_v34 = vpop.xlane.xlu0 %189 }
 0x19c   :  { %v201_v35 = vmul.f32 %v200_v33, %v190_v34 }
 0x19e   :  { %v203_v36 = vsub.f32 %v186_v20, %v201_v35 }
 0x1a0   :  { %v205_v37 = vmul.f32 %v203_v36, %v203_v36 }
 0x1a2   :  { %v207_v38 = vsel %vm109_vm0, %v205_v37, 0.0 }
 0x1a3   :  { %208 = vadd.xlane.f32.xlu1 %v207_v38  ;;  %v193_v39 = vpop.xlane.xlu0 %192 }
 0x1a4   :  { %v202_v40 = vmul.f32 %v200_v33, %v193_v39 }
 0x1a6   :  { %v204_v41 = vsub.f32 %v187_v25, %v202_v40 }
 0x1a8   :  { %v206_v42 = vmul.f32 %v204_v41, %v204_v41 }
 0x1aa   :  { %v210_v43 = vsel %vm109_vm0, %v206_v42, 0.0 }
 0x1ab   :  { %211 = vadd.xlane.f32.xlu1 %v210_v43 }
 0x216   :  { %v209_v44 = vpop.xlane.xlu1 %208 }
 0x217   :  { %v213_v45 = vmul.f32 %v209_v44, %v200_v33 }
 0x219   :  { %v215_v46 = vadd.f32 1e-05, %v213_v45 }
 0x21b   :  { %311 = vrsqrt.f32 %v215_v46  ;;  %vm223_vm4 = vweird.f32 %v215_v46 }
 0x21e   :  { %v212_v47 = vpop.xlane.xlu1 %211 }
 0x21f   :  { %v214_v48 = vmul.f32 %v212_v47, %v200_v33 }
 0x221   :  { %v312_v49 = vpop.eup %311  ;;  %v216_v50 = vadd.f32 1e-05, %v214_v48 }
 0x222   :  { %v218_v51 = vmul.f32 %v312_v49, %v215_v46  ;;  %vm224_vm3 = vweird.f32 %v312_v49 }
 0x223   :  { %313 = vrsqrt.f32 %v216_v50  ;;  %vm225_vm5 = vmor %vm223_vm4, %vm224_vm3  ;;  %vm233_vm8 = vweird.f32 %v216_v50 }
 0x224   :  { %v219_v52 = vmul.f32 %v312_v49, %v218_v51 }
 0x226   :  { %v220_v53 = vmul.f32 0.5, %v219_v52 }
 0x228   :  { %v221_v54 = vsub.f32 1.5, %v220_v53 }
 0x229   :  { %v314_v55 = vpop.eup %313 }
 0x22a   :  { %v222_v56 = vmul.f32 %v312_v49, %v221_v54  ;;  %v228_v57 = vmul.f32 %v314_v55, %v216_v50  ;;  %vm234_vm6 = vweird.f32 %v314_v55 }
 0x22b   :  { %vm235_vm9 = vmor %vm233_vm8, %vm234_vm6 }
 0x22c   :  { %v226_v59 = vsel %vm225_vm5, %v312_v49, %v222_v56  ;;  %v229_v60 = vmul.f32 %v314_v55, %v228_v57 }
 0x22d   :  { %v237_v62 = vmul.f32 %v226_v59, %v203_v36 }
 0x22e   :  { %v230_v63 = vmul.f32 0.5, %v229_v60 }
 0x22f   :  { %v243_v0 = vmul.f32 %v307_v58, %v237_v62 }
 0x230   :  { %v231_v1 = vsub.f32 1.5, %v230_v63 }
 0x231   :  { %v249_v2 = vadd.f32 %v308_v61, %v243_v0 }
 0x232   :  { %v232_v3 = vmul.f32 %v314_v55, %v231_v1 }
 0x233   :  { %v251_v4 = vpack.c.bf16 %v249_v2, %v249_v2 }
 0x234   :  { %v236_v5 = vsel %vm235_vm9, %v314_v55, %v232_v3 }
 0x235   :  { %254 = vst.msk [vmem:[%s516_s7] sm:$0xf] %vm253_vm7, %v251_v4  ;;  %v238_v6 = vmul.f32 %v236_v5, %v204_v41 }
 0x237   :  { %v244_v7 = vmul.f32 %v307_v58, %v238_v6 }
 0x239   :  { %v250_v8 = vadd.f32 %v308_v61, %v244_v7 }
 0x23b   :  { %v252_v9 = vpack.c.bf16 %v250_v8, %v250_v8 }
 0x23d   :  { %255 = vst.msk [vmem:[%s516_s7 + $0x4] sm:$0xf] %vm253_vm7, %v252_v9 }
 0x23e   :  { %260 = vsyncpa [#allocation3], 1 }
 0x23f   :  { %261 = vsyncpa [#allocation5], 1 }
 0x240   :  { %262 = vsyncpa [#allocation8], 1 }

// kernel: transformer_forward.9
= control target key start
LH: loop header
LB: loop body
LE: loop exit
PB: predicated region body
PF: predicated region fallthrough
CT: control target
= control target key end

     0   :  { %12 = vsyncpa [#allocation3], 0  ;;  %s1334_s0 = inlined_call_operand.vmem [shape: bf16[2,8,32], index: 0, kind: input, shape index: {}]   ;;  %s1335_s1 = inlined_call_operand.vmem [shape: bf16[32,96], index: 1, kind: input, shape index: {}]   ;;  %s1336_s2 = inlined_call_operand.hbm [shape: f32[1,96], index: 2, kind: input, shape index: {}]   ;;  %s1337_s3 = inlined_call_operand.hbm [shape: bf16[32,32], index: 3, kind: input, shape index: {}]   ;;  %s1338_s4 = inlined_call_operand.hbm [shape: f32[1,32], index: 4, kind: input, shape index: {}]   ;;  %s1339_s5 = inlined_call_operand.hbm [shape: f32[1,32], index: 5, kind: input, shape index: {}]   ;;  %s1340_s6 = inlined_call_operand.hbm [shape: f32[1,32], index: 6, kind: input, shape index: {}]   ;;  %s1341_s7 = inlined_call_operand.vmem [shape: bf16[2,8,32], index: 7, kind: output, shape index: {}]  }
   0x1   :  { %13 = vsyncpa [#allocation5], 0 }
   0x2   :  { %14 = vsyncpa [#allocation8], 0  ;;  %s1202_s24 = smov 0  }
   0x3 LB: > { %s229_s27 = sshll.u32 %s1337_s3, 4  ;;  %s1211_s28 = sadd.s32 4294967295, %s1138_s24   ;;  %s1138_s24 = sphi %s1202_s24, %s20_s24   ;;  %s230_s27 = int_to_ptr.hbm [resolvable:$true] %s229_s27 }
   0x4   : > { %p823_p0 = scmp.ge.s32.totalorder %s1138_s24, 1  ;;  %p203_p1 = scmp.lt.s32.totalorder %s1138_s24, 3 }
   0x5   : > { %p906_p2 = scmp.eq.s32.totalorder %s1211_s28, 0  ;;  %s1140_s30 = smov [#allocation4]  }
   0x6   : > { %p1216_p3 = pnand %p823_p0, %p203_p1  ;;  %s231_s8 = sshll.u32 %s1140_s30, 4  ;;  %s232_s8 = int_to_ptr.vmem [resolvable:$true] %s231_s8 }
   0x7   : > { %s256_s11 = sshll.u32 %s1339_s5, 4  ;;  %s1141_s13 = smov [#allocation7]   ;;  %s257_s11 = int_to_ptr.hbm [resolvable:$true] %s256_s11 }
   0x8   : > { %p890_p4 = pneg %p1216_p3  ;;  %s258_s14 = sshll.u32 %s1141_s13, 4  ;;  %s259_s14 = int_to_ptr.vmem [resolvable:$true] %s258_s14 }
   0x9   : > { %s218_s17 = sshll.u32 %s1336_s2, 4  ;;  %s1142_s18 = smov 64   ;;  %s219_s17 = int_to_ptr.hbm [resolvable:$true] %s218_s17 }
   0xa   : > { %p1227_p5 = pnand %p906_p2, %p890_p4  ;;  %s1143_s19 = smov 4  }
   0xb   : > { %s1144_s20 = smov [#allocation2]   ;;  %s244_s25 = sshll.u32 %s1338_s4, 4  ;;  %s245_s25 = int_to_ptr.hbm [resolvable:$true] %s244_s25 }
   0xc   : > { %896 = dma.hbm_to_vmem [thread:$0]  (!%p1227_p5), %s230_s27, 256, %s232_s8, [#allocation5], %s1142_s18, %s1142_s18, %s1143_s19  }
   0xd   : > { %902 = dma.hbm_to_vmem [thread:$0]  (!%p1227_p5), %s257_s11, 16, %s259_s14, [#allocation8]  }
   0xe   : > { %s220_s21 = sshll.u32 %s1144_s20, 4  ;;  %s268_s9 = sshll.u32 %s1340_s6, 4  ;;  %s221_s21 = int_to_ptr.vmem [resolvable:$true] %s220_s21  ;;  %s269_s9 = int_to_ptr.hbm [resolvable:$true] %s268_s9 }
   0xf   : > { %893 = dma.hbm_to_vmem [thread:$0]  (!%p1227_p5), %s219_s17, 16, %s221_s21, [#allocation3]  }
  0x10   : > { %s1145_s10 = smov [#allocation6]   ;;  %s1146_s8 = smov [#allocation9]  }
  0x11   : > { %s246_s27 = sshll.u32 %s1145_s10, 4  ;;  %s270_s11 = sshll.u32 %s1146_s8, 4  ;;  %s247_s27 = int_to_ptr.vmem [resolvable:$true] %s246_s27  ;;  %s271_s11 = int_to_ptr.vmem [resolvable:$true] %s270_s11 }
  0x12   : > { %899 = dma.hbm_to_vmem [thread:$0]  (!%p1227_p5), %s245_s25, 16, %s247_s27, [#allocation5]  }
  0x13   : > { %905 = dma.hbm_to_vmem [thread:$0]  (!%p1227_p5), %s269_s9, 16, %s271_s11, [#allocation8]  }
  0x14   : > { %290 = sbr.rel (%p1216_p3) target bundleno = 1377 (0x561), region = 48 }
  0x19   : > { %1125 = dma.done.wait (%p906_p2), [#allocation3], 16  }
  0x1a   : > { %1127 = vsyncadd (%p906_p2), [#allocation3], 4294967280 }
  0x1b   : > { %1129 = dma.done.wait (%p906_p2), [#allocation5], 272  }
  0x1c   : > { %1131 = vsyncadd (%p906_p2), [#allocation5], 4294967024 }
  0x1d   : > { %1133 = dma.done.wait (%p906_p2), [#allocation8], 32  }
  0x1e   : > { %1135 = vsyncadd (%p906_p2), [#allocation8], 4294967264  ;;  %p341_p6 = scmp.lt.s32.totalorder %s1211_s28, 1  ;;  %v867_v0 = vld [vmem:[%s1335_s1 + $0x8] sm:$0xff]  ;;  %v866_v1 = vld [vmem:[%s1335_s1] sm:$0xff]  ;;  %vm371_vm0 = vcmask 261120  }
  0x1f   : > { %381 = vmatpush.bf16.msra.mxu0 %v867_v0  ;;  %v946_v3 = vld [vmem:[#allocation2] ss:$0 sm:$0xff]  ;;  %s1147_s19 = smov 104   ;;  %s1148_s20 = smov 120   ;;  %vm394_vm1 = vcmask 64512   ;;  %vm432_vm2 = vcmask 1043456  }
  0x20   : > { %s1345_s28 = smov (!%p341_p6, %s1211_s28), 1  ;;  %s1149_s21 = smov 96   ;;  %vm633_vm3 = vcmask 130048   ;;  %vm635_vm4 = vcmask 195584   ;;  %vm716_vm9 = vcmask 257024  }
  0x21   : > { %s836_s13 = sshll.u32 %s1345_s28, 2  ;;  %s1150_s22 = smov 80  }
  0x22   : > { %s344_s18 = scalar_lea.vmem %s1334_s0, %s836_s13  ;;  %s1151_s23 = smov 72  }
  0x23   : > { %382 = vmatpush.bf16.msra.mxu0 %v866_v1  ;;  %v1280_v2 = vld [vmem:[%s344_s18] sm:$0xf]  ;;  %s1152_s25 = smov 88   ;;  %s1153_s26 = smov 112  }
  0x24   : > { %s1154_s30 = smov 64   ;;  %s1155_s9 = smov 40  }
  0x25   : > { %s1156_s10 = smov 56   ;;  %s1157_s27 = smov 48  }
  0x26   : > { %846 = vmatmul.msk.bf16.vlgmr.msra.gmra.mxu0 %vm371_vm0, %v1280_v2  ;;  %s1158_s8 = smov 8   ;;  %s1159_s11 = smov 16  }
  0x27   : > { %s1160_s29 = smov 24   ;;  %s348_s15 = scalar_lea.vmem %s1341_s7, %s836_s13 }
  0xa3   : > { %v384_v4 = vpop.f32.mrf.mxu0 }
  0xa4   : > { %v385_v5 = vadd.f32 %v946_v3, %v384_v4 }
  0xa6   : > { %v388_v6 = vpack.c.bf16 %v385_v5, %v385_v5 }
  0xa8   : > { %v390_v7 = vunpack.c.l.b16 %v388_v6 }
  0xaa   : > { %v1284_v8 = vpack.c.b16 %v390_v7, %v390_v7 }
  0xab   : > { %v386_v9 = vpop.f32.mrf.mxu0 }
  0xac   : > { %563 = vrot.lane.b32.xlu2 %v1284_v8, %s1147_s19  ;;  %449 = vrot.lane.b32.xlu1 %v1284_v8, %s1148_s20 }
  0xad   : > { %392 = vrot.lane.b32.xlu0 %v1284_v8, %s1149_s21 }
  0xb4   : > { %508 = vrot.lane.b32.xlu2 %v1284_v8, %s1150_s22  ;;  %565 = vrot.lane.b32.xlu1 %v1284_v8, %s1151_s23 }
  0xb5   : > { %451 = vrot.lane.b32.xlu0 %v1284_v8, %s1152_s25 }
  0xbd   : > { %506 = vrot.lane.b32.xlu0 %v1284_v8, %s1153_s26 }
 0x106   : > { %v564_v10 = vpop.permute.xlu2 %563 }
 0x10e   : > { %v509_v11 = vpop.permute.xlu2 %508 }
 0x10f   : > { %v514_v12 = vsel %vm394_vm1, %v509_v11, 0 }
 0x110   : > { %523 = vmatpush.bf16.xpose.msrb.mxu0 %v514_v12 }
 0x11e   : > { %v450_v13 = vpop.permute.xlu1 %449 }
 0x11f   : > { %v393_v14 = vpop.permute.xlu0 %392 }
 0x120   : > { %v399_v15 = vsel %vm394_vm1, %v393_v14, 0 }
 0x121   : > { %408 = vmatpush.bf16.xpose.msra.mxu1 %v399_v15 }
 0x126   : > { %v566_v16 = vpop.permute.xlu1 %565 }
 0x127   : > { %v452_v17 = vpop.permute.xlu0 %451  ;;  %v571_v18 = vsel %vm394_vm1, %v566_v16, 0 }
 0x128   : > { %847 = vmatmul.msk.bf16.vlgmr.msra.gmra.mxu1 %vm394_vm1, %v388_v6  ;;  %v457_v19 = vsel %vm394_vm1, %v452_v17, 0 }
 0x129   : > { %466 = vmatpush.bf16.xpose.msra.mxu3 %v457_v19 }
 0x12f   : > { %v507_v20 = vpop.permute.xlu0 %506 }
 0x130   : > { %849 = vmatmul.msk.bf16.vlgmr.msra.gmra.mxu3 %vm394_vm1, %v450_v13  ;;  %851 = vmatmul.msk.bf16.vlgmr.msrb.gmra.mxu0 %vm394_vm1, %v507_v20 }
 0x131   : > { %580 = vmatpush.bf16.xpose.msrb.mxu3 %v571_v18 }
 0x140   : > { %853 = vmatmul.msk.bf16.vlgmr.msrb.gmra.mxu3 %vm394_vm1, %v564_v10 }
 0x1a5   : > { %v410_v21 = vpop.f32.mrf.mxu1 }
 0x1a6   : > { %v414_v22 = vmul.f32 0.35355338, %v410_v21 }
 0x1a8   : > { %v415_v23 = vsel %vm394_vm1, %v414_v22, -inf }
 0x1a9   : > { %416 = vmax.xlane.f32.xlu1 %v415_v23 }
 0x1ad   : > { %v412_v24 = vpop.f32.mrf.mxu1  ;;  %v525_v25 = vpop.f32.mrf.mxu0 }
 0x1ae   : > { %v529_v30 = vmul.f32 0.35355338, %v525_v25 }
 0x1b0   : > { %v530_v32 = vsel %vm394_vm1, %v529_v30, -inf }
 0x1b3   : > { %v468_v26 = vpop.f32.mrf.mxu3 }
 0x1b4   : > { %v472_v27 = vmul.f32 0.35355338, %v468_v26  ;;  %v869_v26 = vld [vmem:[#allocation4 + $0x8] sm:$0xff] }
 0x1b5   : > { %v527_v28 = vpop.f32.mrf.mxu0  ;;  %667 = vmatpush.bf16.msra.mxu0 %v869_v26 }
 0x1b6   : > { %v473_v29 = vsel %vm394_vm1, %v472_v27, -inf }
 0x1b7   : > { %474 = vmax.xlane.f32.xlu2 %v473_v29 }
 0x1bb   : > { %v470_v31 = vpop.f32.mrf.mxu3 }
 0x1bf   : > { %531 = vmax.xlane.f32.xlu2 %v530_v32 }
 0x1c3   : > { %v582_v33 = vpop.f32.mrf.mxu3 }
 0x1c4   : > { %v586_v34 = vmul.f32 0.35355338, %v582_v33 }
 0x1c6   : > { %v587_v35 = vsel %vm394_vm1, %v586_v34, -inf }
 0x1c7   : > { %588 = vmax.xlane.f32.xlu0 %v587_v35  ;;  %v947_v35 = vld [vmem:[#allocation6] ss:$0 sm:$0xff] }
 0x1cb   : > { %v584_v36 = vpop.f32.mrf.mxu3 }
 0x1cc   : > { %v674_v36 = vunpack.c.l.bf16 %v1280_v2 }
 0x1d7   : > { %427 = vrot.lane.b32.xlu2 %v1284_v8, %s1154_s30 }
 0x1df   : > { %599 = vrot.lane.b32.xlu2 %v1284_v8, %s1155_s9 }
 0x21c   : > { %v417_v37 = vpop.xlane.xlu1 %416 }
 0x21d   : > { %v418_v38 = vsub.f32 %v414_v22, %v417_v37 }
 0x21f   : > { %v419_v39 = vmul.f32 1.442695, %v418_v38 }
 0x221   : > { %950 = vpow2.f32 %v419_v39 }
 0x227   : > { %v951_v40 = vpop.eup %950 }
 0x228   : > { %v421_v41 = vsel %vm394_vm1, %v951_v40, 0.0 }
 0x229   : > { %422 = vadd.xlane.f32.xlu1 %v421_v41 }
 0x22a   : > { %v475_v42 = vpop.xlane.xlu2 %474 }
 0x22b   : > { %v476_v45 = vsub.f32 %v472_v27, %v475_v42  ;;  %v868_v27 = vld [vmem:[#allocation4] sm:$0xff]  ;;  %v1161_v42 = vmov 32.0  }
 0x22c   : > { %668 = vmatpush.bf16.msra.mxu0 %v868_v27 }
 0x22d   : > { %v477_v47 = vmul.f32 1.442695, %v476_v45 }
 0x232   : > { %v532_v43 = vpop.xlane.xlu2 %531 }
 0x233   : > { %v533_v44 = vsub.f32 %v529_v30, %v532_v43 }
 0x235   : > { %v534_v46 = vmul.f32 1.442695, %v533_v44 }
 0x237   : > { %952 = vpow2.f32 %v534_v46 }
 0x238   : > { %954 = vpow2.f32 %v477_v47 }
 0x23a   : > { %v428_v48 = vpop.permute.xlu2 %427  ;;  %v589_v49 = vpop.xlane.xlu0 %588 }
 0x23b   : > { %v434_v50 = vsel %vm432_vm2, %v428_v48, 0  ;;  %v590_v52 = vsub.f32 %v586_v34, %v589_v49 }
 0x23c   : > { %443 = vmatpush.bf16.msra.mxu2 %v434_v50 }
 0x23d   : > { %v953_v51 = vpop.eup %952  ;;  %v591_v54 = vmul.f32 1.442695, %v590_v52 }
 0x23e   : > { %v536_v53 = vsel %vm394_vm1, %v953_v51, 0.0  ;;  %v955_v55 = vpop.eup %954 }
 0x23f   : > { %537 = vadd.xlane.f32.xlu0 %v536_v53  ;;  %956 = vpow2.f32 %v591_v54  ;;  %v479_v56 = vsel %vm394_vm1, %v955_v55, 0.0 }
 0x242   : > { %485 = vrot.lane.b32.xlu1 %v1284_v8, %s1156_s10  ;;  %v600_v0 = vpop.permute.xlu2 %599 }
 0x243   : > { %v605_v4 = vsel %vm432_vm2, %v600_v0, 0  ;;  %v949_v0 = vld [vmem:[#allocation9] ss:$0 sm:$0xff] }
 0x245   : > { %v957_v57 = vpop.eup %956 }
 0x246   : > { %v593_v58 = vsel %vm394_vm1, %v957_v57, 0.0 }
 0x247   : > { %480 = vadd.xlane.f32.xlu0 %v479_v56 }
 0x24f   : > { %594 = vadd.xlane.f32.xlu0 %v593_v58 }
 0x263   : > { %542 = vrot.lane.b32.xlu0 %v1284_v8, %s1157_s27 }
 0x29c   : > { %v423_v59 = vpop.xlane.xlu1 %422 }
 0x29d   : > { %958 = vrcp.f32 %v423_v59 }
 0x2a3   : > { %v959_v60 = vpop.eup %958 }
 0x2a4   : > { %v425_v61 = vmul.f32 %v959_v60, %v951_v40 }
 0x2a6   : > { %v426_v62 = vpack.c.bf16 %v425_v61, %v425_v61 }
 0x2a8   : > { %848 = vmatmul.msk.bf16.vlgmr.msra.gmra.mxu2 %vm394_vm1, %v426_v62  ;;  %v948_v62 = vld [vmem:[#allocation7] ss:$0 sm:$0xff] }
 0x2b2   : > { %v538_v63 = vpop.xlane.xlu0 %537 }
 0x2b4   : > { %v486_v1 = vpop.permute.xlu1 %485 }
 0x2b5   : > { %v491_v3 = vsel %vm432_vm2, %v486_v1, 0 }
 0x2b6   : > { %500 = vmatpush.bf16.msrb.mxu2 %v491_v3 }
 0x2ba   : > { %614 = vmatpush.bf16.msra.mxu2 %v605_v4  ;;  %v481_v5 = vpop.xlane.xlu0 %480 }
 0x2bb   : > { %960 = vrcp.f32 %v481_v5 }
 0x2c1   : > { %v961_v6 = vpop.eup %960 }
 0x2c2   : > { %v483_v7 = vmul.f32 %v961_v6, %v955_v55  ;;  %v595_v8 = vpop.xlane.xlu0 %594 }
 0x2c3   : > { %962 = vrcp.f32 %v595_v8 }
 0x2c4   : > { %v484_v9 = vpack.c.bf16 %v483_v7, %v483_v7  ;;  %964 = vrcp.f32 %v538_v63 }
 0x2c5   : > { %966 = vrcp.f32 %v1161_v42 }
 0x2c6   : > { %850 = vmatmul.msk.bf16.vlgmr.msrb.gmra.mxu2 %vm394_vm1, %v484_v9 }
 0x2c9   : > { %v963_v10 = vpop.eup %962 }
 0x2ca   : > { %v597_v11 = vmul.f32 %v963_v10, %v957_v57  ;;  %v965_v12 = vpop.eup %964 }
 0x2cb   : > { %v540_v13 = vmul.f32 %v965_v12, %v953_v51  ;;  %v967_v43 = vpop.eup %966 }
 0x2cc   : > { %v598_v14 = vpack.c.bf16 %v597_v11, %v597_v11  ;;  %v680_v44 = vmul.f32 32.0, %v967_v43  ;;  %vm684_vm5 = vweird.f32 %v967_v43 }
 0x2cd   : > { %v541_v17 = vpack.c.bf16 %v540_v13, %v540_v13 }
 0x2ce   : > { %v681_v45 = vsub.f32 1.0, %v680_v44 }
 0x2d0   : > { %v682_v46 = vmul.f32 %v967_v43, %v681_v45 }
 0x2d2   : > { %v683_v47 = vadd.f32 %v967_v43, %v682_v46 }
 0x2d4   : > { %v685_v48 = vsel %vm684_vm5, %v967_v43, %v683_v47 }
 0x2d5   : > { %v543_v15 = vpop.permute.xlu0 %542 }
 0x2d6   : > { %854 = vmatmul.msk.bf16.vlgmr.msra.gmra.mxu2 %vm394_vm1, %v598_v14  ;;  %v548_v16 = vsel %vm432_vm2, %v543_v15, 0 }
 0x2d7   : > { %557 = vmatpush.bf16.msrb.mxu1 %v548_v16 }
 0x2da   : > { %852 = vmatmul.msk.bf16.vlgmr.msrb.gmra.mxu1 %vm394_vm1, %v541_v17 }
 0x32b   : > { %v445_v18 = vpop.f32.mrf.mxu2 }
 0x333   : > { %v447_v19 = vpop.f32.mrf.mxu2 }
 0x349   : > { %v502_v20 = vpop.f32.mrf.mxu2 }
 0x34a   : > { %621 = vrot.lane.b32.xlu1 %v502_v20, %s1158_s8 }
 0x351   : > { %v504_v21 = vpop.f32.mrf.mxu2 }
 0x357   : > { %v559_v22 = vpop.f32.mrf.mxu1 }
 0x358   : > { %625 = vrot.lane.b32.xlu2 %v559_v22, %s1159_s11 }
 0x359   : > { %v616_v23 = vpop.f32.mrf.mxu2 }
 0x35a   : > { %629 = vrot.lane.b32.xlu1 %v616_v23, %s1160_s29 }
 0x35f   : > { %v561_v24 = vpop.f32.mrf.mxu1 }
 0x361   : > { %v618_v25 = vpop.f32.mrf.mxu2 }
 0x3b2   : > { %v626_v30 = vpop.permute.xlu2 %625 }
 0x3bc   : > { %v622_v28 = vpop.permute.xlu1 %621 }
 0x3bd   : > { %v632_v29 = vsel %vm394_vm1, %v445_v18, %v622_v28 }
 0x3be   : > { %v634_v32 = vsel %vm633_vm3, %v632_v29, %v626_v30 }
 0x3cc   : > { %v630_v31 = vpop.permute.xlu1 %629 }
 0x3cd   : > { %v636_v33 = vsel %vm635_vm4, %v634_v32, %v630_v31 }
 0x3ce   : > { %v637_v34 = vpack.c.bf16 %v636_v33, %v636_v33 }
 0x3d0   : > { %863 = vmatmul.msk.bf16.vlgmr.msra.gmra.mxu0 %vm371_vm0, %v637_v34 }
 0x44d   : > { %v670_v37 = vpop.f32.mrf.mxu0 }
 0x44e   : > { %v671_v38 = vadd.f32 %v947_v35, %v670_v37 }
 0x450   : > { %v675_v39 = vadd.f32 %v674_v36, %v671_v38 }
 0x452   : > { %v676_v40 = vsel %vm371_vm0, %v675_v39, 0.0 }
 0x453   : > { %677 = vadd.xlane.f32.xlu2 %v676_v40 }
 0x455   : > { %v672_v41 = vpop.f32.mrf.mxu0 }
 0x4c6   : > { %v678_v49 = vpop.xlane.xlu2 %677 }
 0x4c7   : > { %v686_v50 = vmul.f32 %v685_v48, %v678_v49 }
 0x4c9   : > { %v687_v51 = vsub.f32 %v675_v39, %v686_v50 }
 0x4cb   : > { %v688_v2 = vmul.f32 %v687_v51, %v687_v51 }
 0x4cd   : > { %v689_v52 = vsel %vm371_vm0, %v688_v2, 0.0 }
 0x4ce   : > { %690 = vadd.xlane.f32.xlu1 %v689_v52 }
 0x541   : > { %v691_v53 = vpop.xlane.xlu1 %690 }
 0x542   : > { %v692_v54 = vmul.f32 %v691_v53, %v685_v48 }
 0x544   : > { %v693_v55 = vadd.f32 1e-05, %v692_v54 }
 0x546   : > { %968 = vrsqrt.f32 %v693_v55  ;;  %vm700_vm7 = vweird.f32 %v693_v55 }
 0x54c   : > { %v969_v56 = vpop.eup %968 }
 0x54d   : > { %v695_v57 = vmul.f32 %v969_v56, %v693_v55  ;;  %vm701_vm6 = vweird.f32 %v969_v56 }
 0x54e   : > { %vm702_vm8 = vmor %vm700_vm7, %vm701_vm6 }
 0x54f   : > { %v696_v58 = vmul.f32 %v969_v56, %v695_v57 }
 0x551   : > { %v697_v59 = vmul.f32 0.5, %v696_v58 }
 0x553   : > { %v698_v60 = vsub.f32 1.5, %v697_v59 }
 0x555   : > { %v699_v61 = vmul.f32 %v969_v56, %v698_v60 }
 0x557   : > { %v703_v63 = vsel %vm702_vm8, %v969_v56, %v699_v61 }
 0x558   : > { %v704_v1 = vmul.f32 %v703_v63, %v687_v51 }
 0x55a   : > { %v709_v3 = vmul.f32 %v948_v62, %v704_v1 }
 0x55c   : > { %v714_v4 = vadd.f32 %v949_v0, %v709_v3 }
 0x55e   : > { %v715_v5 = vpack.c.bf16 %v714_v4, %v714_v4 }
 0x560   : > { %717 = vst.msk [vmem:[%s348_s15] sm:$0xf] %vm716_vm9, %v715_v5 }
 0x561 PF: > { %s20_s24 = sadd.s32 1, %s1138_s24  }
 0x562   : > { %p17_p7 = scmp.ge.s32.totalorder %s20_s24, 4  }
 0x564   :  { %19 = sbr.rel (!%p17_p7) target bundleno = 3 (0x3), region = 99 }
 0x569   :  { %737 = vsyncpa [#allocation3], 1 }
 0x56a   :  { %739 = vsyncpa [#allocation3 + $0x1], 1 }
 0x56b   :  { %740 = vsyncpa [#allocation5], 1 }
 0x56c   :  { %741 = vsyncpa [#allocation8], 1 }

// kernel: transformer_forward.11
= control target key start
LH: loop header
LB: loop body
LE: loop exit
PB: predicated region body
PF: predicated region fallthrough
CT: control target
= control target key end

     0   :  { %vm26_vm0 = vcmask 261120   ;;  %v137_v5 = vmov 32.0   ;;  %v101_v57 = vlaneseq  ;;  %vm105_vm8 = vcmask 1041409   ;;  %s192_s0 = inlined_call_operand.vmem [shape: bf16[2,8,32], index: 0, kind: input, shape index: {}]   ;;  %s193_s1 = inlined_call_operand.vmem [shape: f32[1,32], index: 1, kind: input, shape index: {}]   ;;  %s194_s2 = inlined_call_operand.vmem [shape: f32[1,32], index: 2, kind: input, shape index: {}]   ;;  %s195_s3 = inlined_call_operand.vmem [shape: f32[8,32], index: 3, kind: input, shape index: {}]   ;;  %s196_s4 = inlined_call_operand.<no memory space> [shape: f32[1,1], index: 4, kind: input, shape index: {}]   ;;  %s197_s5 = inlined_call_operand.vmem [shape: f32[2,1], index: 5, kind: output, shape index: {}]  }
   0x1   :  { %v124_v0 = vld [vmem:[%s192_s0] sm:$0xff]   ;;  %131 = vrcp.f32 %v137_v5  ;;  %v10_v55 = vstv %s196_s4  ;;  %vm108_vm9 = vcmask 58368   ;;  %vm117_vm10 = vcmask 1024  }
   0x2   :  { %v125_v1 = vunpack.c.l.bf16 %v124_v0  ;;  %v126_v3 = vunpack.c.h.bf16 %v124_v0  ;;  %v128_v36 = vld [vmem:[%s193_s1] ss:$0 sm:$0xff]  ;;  %11 = vst [vmem:[#allocation2] sm:$0x1] %v10_v55  ;;  %v102_v58 = vand.u32 127, %v101_v57 }
   0x3   :  { %v129_v40 = vld [vmem:[%s194_s2] ss:$0 sm:$0xff] }
   0x4   :  { %v27_v2 = vsel %vm26_vm0, %v125_v1, 0.0  ;;  %v30_v4 = vsel %vm26_vm0, %v126_v3, 0.0  ;;  %v90_v44 = vld [vmem:[%s195_s3] sm:$0xff] }
   0x5   :  { %28 = vadd.xlane.f32.xlu0 %v27_v2 }
   0x7   :  { %v132_v6 = vpop.eup %131 }
   0x8   :  { %v34_v7 = vmul.f32 32.0, %v132_v6  ;;  %vm38_vm1 = vweird.f32 %v132_v6 }
   0x9   :  { %v130_v0 = vld [vmem:[#allocation2] ss:$0 sm:$0xff] }
   0xa   :  { %v35_v8 = vsub.f32 1.0, %v34_v7 }
   0xc   :  { %v36_v9 = vmul.f32 %v132_v6, %v35_v8 }
   0xd   :  { %31 = vadd.xlane.f32.xlu0 %v30_v4 }
   0xe   :  { %v37_v10 = vadd.f32 %v132_v6, %v36_v9 }
  0x10   :  { %v39_v11 = vsel %vm38_vm1, %v132_v6, %v37_v10 }
  0x78   :  { %v29_v12 = vpop.xlane.xlu0 %28 }
  0x79   :  { %v40_v13 = vmul.f32 %v39_v11, %v29_v12 }
  0x7b   :  { %v42_v14 = vsub.f32 %v125_v1, %v40_v13 }
  0x7d   :  { %v44_v15 = vmul.f32 %v42_v14, %v42_v14 }
  0x7f   :  { %v46_v16 = vsel %vm26_vm0, %v44_v15, 0.0 }
  0x80   :  { %47 = vadd.xlane.f32.xlu1 %v46_v16  ;;  %v32_v17 = vpop.xlane.xlu0 %31 }
  0x81   :  { %v41_v18 = vmul.f32 %v39_v11, %v32_v17 }
  0x83   :  { %v43_v19 = vsub.f32 %v126_v3, %v41_v18 }
  0x85   :  { %v45_v20 = vmul.f32 %v43_v19, %v43_v19 }
  0x87   :  { %v49_v21 = vsel %vm26_vm0, %v45_v20, 0.0 }
  0x88   :  { %50 = vadd.xlane.f32.xlu1 %v49_v21 }
  0xf3   :  { %v48_v22 = vpop.xlane.xlu1 %47 }
  0xf4   :  { %v52_v23 = vmul.f32 %v48_v22, %v39_v11 }
  0xf6   :  { %v54_v24 = vadd.f32 1e-05, %v52_v23 }
  0xf8   :  { %133 = vrsqrt.f32 %v54_v24  ;;  %vm62_vm3 = vweird.f32 %v54_v24 }
  0xfb   :  { %v51_v25 = vpop.xlane.xlu1 %50 }
  0xfc   :  { %v53_v26 = vmul.f32 %v51_v25, %v39_v11 }
  0xfe   :  { %v134_v27 = vpop.eup %133  ;;  %v55_v28 = vadd.f32 1e-05, %v53_v26 }
  0xff   :  { %v57_v29 = vmul.f32 %v134_v27, %v54_v24  ;;  %vm63_vm2 = vweird.f32 %v134_v27 }
 0x100   :  { %135 = vrsqrt.f32 %v55_v28  ;;  %vm64_vm4 = vmor %vm62_vm3, %vm63_vm2  ;;  %vm72_vm6 = vweird.f32 %v55_v28 }
 0x101   :  { %v58_v30 = vmul.f32 %v134_v27, %v57_v29 }
 0x103   :  { %v59_v31 = vmul.f32 0.5, %v58_v30 }
 0x105   :  { %v60_v32 = vsub.f32 1.5, %v59_v31 }
 0x106   :  { %v136_v33 = vpop.eup %135 }
 0x107   :  { %v61_v34 = vmul.f32 %v134_v27, %v60_v32  ;;  %v67_v35 = vmul.f32 %v136_v33, %v55_v28  ;;  %vm73_vm5 = vweird.f32 %v136_v33 }
 0x108   :  { %vm74_vm7 = vmor %vm72_vm6, %vm73_vm5 }
 0x109   :  { %v68_v37 = vmul.f32 %v136_v33, %v67_v35  ;;  %v65_v38 = vsel %vm64_vm4, %v134_v27, %v61_v34 }
 0x10a   :  { %v76_v39 = vmul.f32 %v65_v38, %v42_v14 }
 0x10b   :  { %v69_v41 = vmul.f32 0.5, %v68_v37 }
 0x10c   :  { %v82_v42 = vmul.f32 %v128_v36, %v76_v39 }
 0x10d   :  { %v70_v43 = vsub.f32 1.5, %v69_v41 }
 0x10e   :  { %v88_v45 = vadd.f32 %v129_v40, %v82_v42 }
 0x10f   :  { %v71_v46 = vmul.f32 %v136_v33, %v70_v43 }
 0x110   :  { %v91_v47 = vmul.f32 %v90_v44, %v88_v45 }
 0x111   :  { %v75_v48 = vsel %vm74_vm7, %v136_v33, %v71_v46 }
 0x112   :  { %v93_v49 = vsel %vm26_vm0, %v91_v47, 0.0  ;;  %v77_v50 = vmul.f32 %v75_v48, %v43_v19 }
 0x113   :  { %94 = vadd.xlane.f32.xlu2 %v93_v49 }
 0x114   :  { %v83_v51 = vmul.f32 %v128_v36, %v77_v50 }
 0x116   :  { %v89_v52 = vadd.f32 %v129_v40, %v83_v51 }
 0x118   :  { %v92_v53 = vmul.f32 %v90_v44, %v89_v52 }
 0x11a   :  { %v96_v54 = vsel %vm26_vm0, %v92_v53, 0.0 }
 0x11b   :  { %97 = vadd.xlane.f32.xlu2 %v96_v54 }
 0x186   :  { %v95_v56 = vpop.xlane.xlu2 %94 }
 0x187   :  { %v103_v60 = vperm.slane %v95_v56, %v102_v58 }
 0x18e   :  { %v98_v59 = vpop.xlane.xlu2 %97 }
 0x18f   :  { %v104_v61 = vperm.slane %v98_v59, %v102_v58 }
 0x191   :  { %v106_v62 = vsel %vm105_vm8, %v104_v61, %v103_v60 }
 0x192   :  { %v109_v63 = vsel %vm108_vm9, %v106_v62, 0.0 }
 0x193   :  { %110 = vadd.xlane.f32.xlu0 %v109_v63 }
 0x206   :  { %v111_v1 = vpop.xlane.xlu0 %110 }
 0x207   :  { %v116_v2 = vadd.f32 %v130_v0, %v111_v1 }
 0x209   :  { %118 = vst.msk [vmem:[%s197_s5] sm:$0x3] %vm117_vm10, %v116_v2 }

// kernel: transformer_forward.10
= control target key start
LH: loop header
LB: loop body
LE: loop exit
PB: predicated region body
PF: predicated region fallthrough
CT: control target
= control target key end

     0   :  { %vm54_vm0 = vcmask 261120   ;;  %vm111_vm1 = vcmask 523264   ;;  %v253_v27 = vmov 32.0   ;;  %vm198_vm7 = vcmask 257024   ;;  %s341_s1 = inlined_call_operand.vmem [shape: bf16[32,64], index: 1, kind: input, shape index: {}]   ;;  %s342_s2 = inlined_call_operand.vmem [shape: f32[1,64], index: 2, kind: input, shape index: {}]   ;;  %s343_s0 = inlined_call_operand.vmem [shape: bf16[16,32], index: 0, kind: input, shape index: {}]   ;;  %s344_s4 = inlined_call_operand.vmem [shape: f32[1,32], index: 4, kind: input, shape index: {}]   ;;  %s345_s3 = inlined_call_operand.vmem [shape: bf16[64,32], index: 3, kind: input, shape index: {}]   ;;  %s346_s5 = inlined_call_operand.vmem [shape: f32[1,32], index: 5, kind: input, shape index: {}]   ;;  %s347_s6 = inlined_call_operand.vmem [shape: f32[1,32], index: 6, kind: input, shape index: {}]   ;;  %s348_s7 = inlined_call_operand.vmem [shape: bf16[16,32], index: 7, kind: output, shape index: {}]  }
   0x1   :  { %v237_v0 = vld [vmem:[%s341_s1 + $0x8] sm:$0xff]  ;;  %v236_v1 = vld [vmem:[%s341_s1] sm:$0xff]  ;;  %v241_v3 = vld [vmem:[%s345_s3 + $0x18] sm:$0xff]  ;;  %247 = vrcp.f32 %v253_v27 }
   0x2   :  { %64 = vmatpush.bf16.msra.mxu0 %v237_v0  ;;  %v235_v2 = vld [vmem:[%s343_s0] sm:$0xff]  ;;  %119 = vmatpush.bf16.msra.mxu1 %v241_v3  ;;  %v240_v4 = vld [vmem:[%s345_s3 + $0x10] sm:$0xff]  ;;  %v239_v5 = vld [vmem:[%s345_s3 + $0x8] sm:$0xff] }
   0x3   :  { %v238_v6 = vld [vmem:[%s345_s3] sm:$0xff] }
   0x4   :  { %v243_v8 = vld [vmem:[%s342_s2] ss:$0 sm:$0xff] }
   0x5   :  { %v27_v15 = vld [vmem:[%s343_s0] sm:$0xff]  }
   0x6   :  { %65 = vmatpush.bf16.msra.mxu0 %v236_v1  ;;  %120 = vmatpush.bf16.msra.mxu1 %v240_v4  ;;  %v244_v16 = vld [vmem:[%s344_s4] ss:$0 sm:$0xff]  ;;  %v129_v17 = vunpack.c.l.bf16 %v27_v15  ;;  %v130_v22 = vunpack.c.h.bf16 %v27_v15 }
   0x7   :  { %v248_v28 = vpop.eup %247  ;;  %v245_v58 = vld [vmem:[%s346_s5] ss:$0 sm:$0xff] }
   0x8   :  { %v140_v29 = vmul.f32 32.0, %v248_v28  ;;  %vm144_vm2 = vweird.f32 %v248_v28  ;;  %v246_v61 = vld [vmem:[%s347_s6] ss:$0 sm:$0xff] }
   0x9   :  { %217 = vmatmul.msk.bf16.vlgmr.msra.gmra.mxu0 %vm54_vm0, %v235_v2 }
   0xa   :  { %121 = vmatpush.bf16.msra.mxu1 %v239_v5  ;;  %v141_v30 = vsub.f32 1.0, %v140_v29 }
   0xc   :  { %v142_v31 = vmul.f32 %v248_v28, %v141_v30 }
   0xe   :  { %122 = vmatpush.bf16.msra.mxu1 %v238_v6  ;;  %v143_v32 = vadd.f32 %v248_v28, %v142_v31 }
  0x10   :  { %v145_v33 = vsel %vm144_vm2, %v248_v28, %v143_v32 }
  0x86   :  { %v67_v7 = vpop.f32.mrf.mxu0 }
  0x87   :  { %v68_v9 = vadd.f32 %v243_v8, %v67_v7 }
  0x89   :  { %v72_v12 = vmax.f32 %v68_v9, 0.0 }
  0x8e   :  { %v69_v10 = vpop.f32.mrf.mxu0 }
  0x8f   :  { %v70_v11 = vadd.f32 %v243_v8, %v69_v10 }
  0x91   :  { %v73_v13 = vmax.f32 %v70_v11, 0.0 }
  0x93   :  { %v74_v14 = vpack.c.bf16 %v73_v13, %v72_v12 }
  0x95   :  { %234 = vmatmul.msk.bf16.vlgmr.msra.gmra.mxu1 %vm111_vm1, %v74_v14 }
 0x112   :  { %v124_v18 = vpop.f32.mrf.mxu1 }
 0x113   :  { %v125_v19 = vadd.f32 %v244_v16, %v124_v18 }
 0x115   :  { %v131_v20 = vadd.f32 %v129_v17, %v125_v19 }
 0x117   :  { %v133_v21 = vsel %vm54_vm0, %v131_v20, 0.0 }
 0x118   :  { %134 = vadd.xlane.f32.xlu0 %v133_v21 }
 0x11a   :  { %v126_v23 = vpop.f32.mrf.mxu1 }
 0x11b   :  { %v127_v24 = vadd.f32 %v244_v16, %v126_v23 }
 0x11d   :  { %v132_v25 = vadd.f32 %v130_v22, %v127_v24 }
 0x11f   :  { %v136_v26 = vsel %vm54_vm0, %v132_v25, 0.0 }
 0x120   :  { %137 = vadd.xlane.f32.xlu0 %v136_v26 }
 0x18b   :  { %v135_v34 = vpop.xlane.xlu0 %134 }
 0x18c   :  { %v146_v35 = vmul.f32 %v145_v33, %v135_v34 }
 0x18e   :  { %v148_v36 = vsub.f32 %v131_v20, %v146_v35 }
 0x190   :  { %v150_v37 = vmul.f32 %v148_v36, %v148_v36 }
 0x192   :  { %v152_v38 = vsel %vm54_vm0, %v150_v37, 0.0 }
 0x193   :  { %153 = vadd.xlane.f32.xlu1 %v152_v38  ;;  %v138_v39 = vpop.xlane.xlu0 %137 }
 0x194   :  { %v147_v40 = vmul.f32 %v145_v33, %v138_v39 }
 0x196   :  { %v149_v41 = vsub.f32 %v132_v25, %v147_v40 }
 0x198   :  { %v151_v42 = vmul.f32 %v149_v41, %v149_v41 }
 0x19a   :  { %v155_v43 = vsel %vm54_vm0, %v151_v42, 0.0 }
 0x19b   :  { %156 = vadd.xlane.f32.xlu1 %v155_v43 }
 0x206   :  { %v154_v44 = vpop.xlane.xlu1 %153 }
 0x207   :  { %v158_v45 = vmul.f32 %v154_v44, %v145_v33 }
 0x209   :  { %v160_v46 = vadd.f32 1e-05, %v158_v45 }
 0x20b   :  { %249 = vrsqrt.f32 %v160_v46  ;;  %vm168_vm4 = vweird.f32 %v160_v46 }
 0x20e   :  { %v157_v47 = vpop.xlane.xlu1 %156 }
 0x20f   :  { %v159_v48 = vmul.f32 %v157_v47, %v145_v33 }
 0x211   :  { %v250_v49 = vpop.eup %249  ;;  %v161_v50 = vadd.f32 1e-05, %v159_v48 }
 0x212   :  { %v163_v51 = vmul.f32 %v250_v49, %v160_v46  ;;  %vm169_vm3 = vweird.f32 %v250_v49 }
 0x213   :  { %251 = vrsqrt.f32 %v161_v50  ;;  %vm170_vm5 = vmor %vm168_vm4, %vm169_vm3  ;;  %vm178_vm8 = vweird.f32 %v161_v50 }
 0x214   :  { %v164_v52 = vmul.f32 %v250_v49, %v163_v51 }
 0x216   :  { %v165_v53 = vmul.f32 0.5, %v164_v52 }
 0x218   :  { %v166_v54 = vsub.f32 1.5, %v165_v53 }
 0x219   :  { %v252_v55 = vpop.eup %251 }
 0x21a   :  { %v167_v56 = vmul.f32 %v250_v49, %v166_v54  ;;  %v173_v57 = vmul.f32 %v252_v55, %v161_v50  ;;  %vm179_vm6 = vweird.f32 %v252_v55 }
 0x21b   :  { %vm180_vm9 = vmor %vm178_vm8, %vm179_vm6 }
 0x21c   :  { %v171_v59 = vsel %vm170_vm5, %v250_v49, %v167_v56  ;;  %v174_v60 = vmul.f32 %v252_v55, %v173_v57 }
 0x21d   :  { %v182_v62 = vmul.f32 %v171_v59, %v148_v36 }
 0x21e   :  { %v175_v63 = vmul.f32 0.5, %v174_v60 }
 0x21f   :  { %v188_v0 = vmul.f32 %v245_v58, %v182_v62 }
 0x220   :  { %v176_v1 = vsub.f32 1.5, %v175_v63 }
 0x221   :  { %v194_v2 = vadd.f32 %v246_v61, %v188_v0 }
 0x222   :  { %v177_v3 = vmul.f32 %v252_v55, %v176_v1 }
 0x223   :  { %v196_v4 = vpack.c.bf16 %v194_v2, %v194_v2 }
 0x224   :  { %v181_v5 = vsel %vm180_vm9, %v252_v55, %v177_v3 }
 0x225   :  { %199 = vst.msk [vmem:[%s348_s7] sm:$0xf] %vm198_vm7, %v196_v4  ;;  %v183_v6 = vmul.f32 %v181_v5, %v149_v41 }
 0x227   :  { %v189_v7 = vmul.f32 %v245_v58, %v183_v6 }
 0x229   :  { %v195_v8 = vadd.f32 %v246_v61, %v189_v7 }
 0x22b   :  { %v197_v9 = vpack.c.bf16 %v195_v8, %v195_v8 }
 0x22d   :  { %200 = vst.msk [vmem:[%s348_s7 + $0x4] sm:$0xf] %vm198_vm7, %v197_v9 }

</bundles_post_ra>
